<compile_context>
chip_gen: v5e
topology: v5e:2x2
jax: 0.10.0
libtpu: 0.0.40
codegen_flags: <defaults>
</compile_context>

<pallas_src>
import math
import functools

import jax
import jax.numpy as jnp
from jax.experimental import pallas as pl
from jax.experimental.pallas import tpu as pltpu


# ----------------------------- in-kernel helpers -----------------------------

def _layernorm(x, g, b):
    # x: [S, H] (f32), g/b: [1, H]; BERT eps = 1e-12.
    mean = jnp.mean(x, axis=-1, keepdims=True)
    c = x - mean
    var = jnp.mean(c * c, axis=-1, keepdims=True)
    return c * jax.lax.rsqrt(var + 1e-12) * g + b


def _gelu_tanh(y):
    # TODO(synk): HF BERT's default hidden_act='gelu' is the erf-based exact
    # GELU; the tanh approximation is kept (difference ~1e-3) to stay on
    # well-supported Mosaic ops.
    c = math.sqrt(2.0 / math.pi)
    return 0.5 * y * (1.0 + jnp.tanh(c * (y + 0.044715 * y * y * y)))


# ----------------------------- fused encoder kernel -----------------------------

def _fused_encoder_kernel(x_ref, eg_ref, eb_ref,
                          wqkv_ref, bqkv_ref, wo_ref, bo_ref,
                          ln1g_ref, ln1b_ref,
                          w1_ref, b1_ref, w2_ref, b2_ref,
                          ln2g_ref, ln2b_ref,
                          o_ref, *, layers, heads):
    """One grid step = one batch element through the whole encoder.

    x_ref:   [1, S, H]  embedded tokens (pre embedding-LayerNorm)
    weights: stacked per-layer refs with leading [L, ...] axis
    o_ref:   [1, 1, H]  CLS token of the final hidden state
    """
    S, H = x_ref.shape[1], x_ref.shape[2]
    dh = H // heads
    scale = 1.0 / math.sqrt(dh)

    # Embedding LayerNorm.
    h = _layernorm(x_ref[0], eg_ref[...], eb_ref[...])           # [S, H]

    for li in range(layers):                                      # unrolled (L small)
        # --- self-attention: fused QKV projection (one [H,3H] matmul) ---
        qkv = (jnp.dot(h, wqkv_ref[li], preferred_element_type=jnp.float32)
               + bqkv_ref[li])                                    # [S, 3H]
        q = qkv[:, 0 * H:1 * H]
        k = qkv[:, 1 * H:2 * H]
        v = qkv[:, 2 * H:3 * H]

        head_outs = []
        for hi in range(heads):                                   # unrolled, static lane slices
            lo = hi * dh
            qh = q[:, lo:lo + dh]                                 # [S, dh]
            kh = k[:, lo:lo + dh]
            vh = v[:, lo:lo + dh]
            # q @ k^T via dot_general on last dims (no materialized transpose).
            s = jax.lax.dot_general(
                qh, kh, (((1,), (1,)), ((), ())),
                preferred_element_type=jnp.float32) * scale       # [S, S]
            m = jnp.max(s, axis=-1, keepdims=True)
            p = jnp.exp(s - m)
            p = p * pl.reciprocal(jnp.sum(p, axis=-1, keepdims=True), approx=True)
            head_outs.append(
                jnp.dot(p, vh, preferred_element_type=jnp.float32))  # [S, dh]
        attn = jnp.concatenate(head_outs, axis=-1)                # [S, H]

        attn = (jnp.dot(attn, wo_ref[li], preferred_element_type=jnp.float32)
                + bo_ref[li])
        h = _layernorm(h + attn, ln1g_ref[li], ln1b_ref[li])      # post-LN residual

        # --- feed-forward ---
        ff = (jnp.dot(h, w1_ref[li], preferred_element_type=jnp.float32)
              + b1_ref[li])
        ff = _gelu_tanh(ff)
        ff = (jnp.dot(ff, w2_ref[li], preferred_element_type=jnp.float32)
              + b2_ref[li])
        h = _layernorm(h + ff, ln2g_ref[li], ln2b_ref[li])

    # ExtractCLSToken: write only row 0 (CLS) of this batch element.
    o_ref[0] = h[0:1, :]


# ----------------------------- params / forward -----------------------------

def init_params(key, vocab=100, max_pos=16, hidden=32, heads=4, ffn=64, layers=2):
    del heads  # head split happens in-kernel; heads only constrain hidden % heads == 0
    ks = jax.random.split(key, 6)
    std = 0.02

    def w(k, shape):
        return (std * jax.random.normal(k, shape)).astype(jnp.float32)

    H, F, L = hidden, ffn, layers
    return {
        "tok_emb": w(ks[0], (vocab, H)),
        "pos_emb": w(ks[1], (max_pos, H)),
        "emb_ln_g": jnp.ones((1, H), jnp.float32),
        "emb_ln_b": jnp.zeros((1, H), jnp.float32),
        # Per-layer weights stacked along a leading L axis; Q|K|V fused.
        "wqkv": w(ks[2], (L, H, 3 * H)),
        "bqkv": jnp.zeros((L, 1, 3 * H), jnp.float32),
        "wo": w(ks[3], (L, H, H)),
        "bo": jnp.zeros((L, 1, H), jnp.float32),
        "ln1_g": jnp.ones((L, 1, H), jnp.float32),
        "ln1_b": jnp.zeros((L, 1, H), jnp.float32),
        "w1": w(ks[4], (L, H, F)),
        "b1": jnp.zeros((L, 1, F), jnp.float32),
        "w2": w(ks[5], (L, F, H)),
        "b2": jnp.zeros((L, 1, H), jnp.float32),
        "ln2_g": jnp.ones((L, 1, H), jnp.float32),
        "ln2_b": jnp.zeros((L, 1, H), jnp.float32),
    }


@functools.partial(jax.jit, static_argnames=("heads",))
def huggingface_model_forward(params, input_ids, heads=4):
    """Equivalent of HuggingFaceModel.forward: encoder -> ExtractCLSToken."""
    B, S = input_ids.shape
    H = params["tok_emb"].shape[1]
    F = params["w1"].shape[2]
    L = params["wqkv"].shape[0]
    assert H % heads == 0

    # Embedding lookup (glue: gather stays in plain JAX).
    # TODO(synk): could move the gather in-kernel via PrefetchScalarGridSpec +
    # pl.Element index_map; modest win at these sizes.
    x = params["tok_emb"][input_ids] + params["pos_emb"][:S][None, :, :]   # [B, S, H]

    kernel = functools.partial(_fused_encoder_kernel, layers=L, heads=heads)

    full3 = lambda b: (0, 0, 0)   # weight blocks: whole array, constant per grid step
    full2 = lambda b: (0, 0)

    cls = pl.pallas_call(
        kernel,
        out_shape=jax.ShapeDtypeStruct((B, 1, H), jnp.float32),
        grid=(B,),
        in_specs=[
            pl.BlockSpec((1, S, H), lambda b: (b, 0, 0)),       # x (per-batch block)
            pl.BlockSpec((1, H), full2),                        # emb_ln_g
            pl.BlockSpec((1, H), full2),                        # emb_ln_b
            pl.BlockSpec((L, H, 3 * H), full3),                 # wqkv
            pl.BlockSpec((L, 1, 3 * H), full3),                 # bqkv
            pl.BlockSpec((L, H, H), full3),                     # wo
            pl.BlockSpec((L, 1, H), full3),                     # bo
            pl.BlockSpec((L, 1, H), full3),                     # ln1_g
            pl.BlockSpec((L, 1, H), full3),                     # ln1_b
            pl.BlockSpec((L, H, F), full3),                     # w1
            pl.BlockSpec((L, 1, F), full3),                     # b1
            pl.BlockSpec((L, F, H), full3),                     # w2
            pl.BlockSpec((L, 1, H), full3),                     # b2
            pl.BlockSpec((L, 1, H), full3),                     # ln2_g
            pl.BlockSpec((L, 1, H), full3),                     # ln2_b
        ],
        out_specs=pl.BlockSpec((1, 1, H), lambda b: (b, 0, 0)),
        compiler_params=pltpu.CompilerParams(
            dimension_semantics=("parallel",)),                 # batch split across TCs (v7x)
    )(x, params["emb_ln_g"], params["emb_ln_b"],
      params["wqkv"], params["bqkv"], params["wo"], params["bo"],
      params["ln1_g"], params["ln1_b"],
      params["w1"], params["b1"], params["w2"], params["b2"],
      params["ln2_g"], params["ln2_b"])

    return cls.reshape(B, H)


# ----------------------------- pure-JAX reference -----------------------------

def reference_forward(params, input_ids, heads):
    B, S = input_ids.shape
    H = params["tok_emb"].shape[1]
    dh = H // heads
    L = params["wqkv"].shape[0]

    def ln(x, g, b):
        mean = jnp.mean(x, axis=-1, keepdims=True)
        var = jnp.mean((x - mean) ** 2, axis=-1, keepdims=True)
        return (x - mean) * jax.lax.rsqrt(var + 1e-12) * g + b

    x = params["tok_emb"][input_ids] + params["pos_emb"][:S][None]
    h = ln(x, params["emb_ln_g"], params["emb_ln_b"])            # [B, S, H]
    for li in range(L):
        qkv = h @ params["wqkv"][li] + params["bqkv"][li]
        q, k, v = jnp.split(qkv, 3, axis=-1)

        def split_heads(t):
            return t.reshape(B, S, heads, dh).transpose(0, 2, 1, 3)

        qh, kh, vh = split_heads(q), split_heads(k), split_heads(v)
        s = jnp.einsum("bhqd,bhkd->bhqk", qh, kh) / math.sqrt(dh)
        p = jax.nn.softmax(s, axis=-1)
        a = jnp.einsum("bhqk,bhkd->bhqd", p, vh).transpose(0, 2, 1, 3).reshape(B, S, H)
        a = a @ params["wo"][li] + params["bo"][li]
        h = ln(h + a, params["ln1_g"][li], params["ln1_b"][li])

        ff = h @ params["w1"][li] + params["b1"][li]
        c = math.sqrt(2.0 / math.pi)
        ff = 0.5 * ff * (1.0 + jnp.tanh(c * (ff + 0.044715 * ff ** 3)))
        ff = ff @ params["w2"][li] + params["b2"][li]
        h = ln(h + ff, params["ln2_g"][li], params["ln2_b"][li])
    return h[:, 0, :]


# ----------------------------- main -----------------------------

if __name__ == "__main__":
    key = jax.random.PRNGKey(0)
    k_params, k_ids = jax.random.split(key)

    B, S = 2, 8
    VOCAB, HIDDEN, HEADS, FFN, LAYERS = 100, 32, 4, 64, 2

    params = init_params(k_params, vocab=VOCAB, max_pos=16, hidden=HIDDEN,
                         heads=HEADS, ffn=FFN, layers=LAYERS)
    input_ids = jax.random.randint(k_ids, (B, S), 0, VOCAB, dtype=jnp.int32)

    out = huggingface_model_forward(params, input_ids, heads=HEADS)
    jax.block_until_ready(out)

    assert out.shape == (B, HIDDEN), out.shape
    assert out.dtype == jnp.float32
    assert bool(jnp.all(jnp.isfinite(out)))

    ref = reference_forward(params, input_ids, HEADS)
    max_err = float(jnp.max(jnp.abs(out - ref)))
    assert bool(jnp.allclose(out, ref, atol=1e-2, rtol=1e-2)), max_err

    print("KERNEL_OK")
</pallas_src>

<mosaic_0001>
module attributes {stable_mosaic.version = 11 : i64} {
  func.func @_fused_encoder_kernel(%arg0: i32, %arg1: memref<1x8x32xf32, #tpu.memory_space<vmem>>, %arg2: memref<1x32xf32, #tpu.memory_space<vmem>>, %arg3: memref<1x32xf32, #tpu.memory_space<vmem>>, %arg4: memref<2x32x96xf32, #tpu.memory_space<vmem>>, %arg5: memref<2x1x96xf32, #tpu.memory_space<vmem>>, %arg6: memref<2x32x32xf32, #tpu.memory_space<vmem>>, %arg7: memref<2x1x32xf32, #tpu.memory_space<vmem>>, %arg8: memref<2x1x32xf32, #tpu.memory_space<vmem>>, %arg9: memref<2x1x32xf32, #tpu.memory_space<vmem>>, %arg10: memref<2x32x64xf32, #tpu.memory_space<vmem>>, %arg11: memref<2x1x64xf32, #tpu.memory_space<vmem>>, %arg12: memref<2x64x32xf32, #tpu.memory_space<vmem>>, %arg13: memref<2x1x32xf32, #tpu.memory_space<vmem>>, %arg14: memref<2x1x32xf32, #tpu.memory_space<vmem>>, %arg15: memref<2x1x32xf32, #tpu.memory_space<vmem>>, %arg16: memref<1x1x32xf32, #tpu.memory_space<vmem>>) attributes {dimension_semantics = [#tpu.dimension_semantics<parallel>], iteration_bounds = array<i64: 2>, scalar_prefetch = 0 : i64, scratch_operands = 0 : i64, tpu.core_type = #tpu.core_type<tc>, window_params = [{transform_indices = @transform_0, window_bounds = array<i64: 1, 8, 32>}, {pipeline_mode = #tpu.pipeline_mode<synchronous>, transform_indices = @transform_1, window_bounds = array<i64: 1, 32>}, {pipeline_mode = #tpu.pipeline_mode<synchronous>, transform_indices = @transform_2, window_bounds = array<i64: 1, 32>}, {pipeline_mode = #tpu.pipeline_mode<synchronous>, transform_indices = @transform_3, window_bounds = array<i64: 2, 32, 96>}, {pipeline_mode = #tpu.pipeline_mode<synchronous>, transform_indices = @transform_4, window_bounds = array<i64: 2, 1, 96>}, {pipeline_mode = #tpu.pipeline_mode<synchronous>, transform_indices = @transform_5, window_bounds = array<i64: 2, 32, 32>}, {pipeline_mode = #tpu.pipeline_mode<synchronous>, transform_indices = @transform_6, window_bounds = array<i64: 2, 1, 32>}, {pipeline_mode = #tpu.pipeline_mode<synchronous>, transform_indices = @transform_7, window_bounds = array<i64: 2, 1, 32>}, {pipeline_mode = #tpu.pipeline_mode<synchronous>, transform_indices = @transform_8, window_bounds = array<i64: 2, 1, 32>}, {pipeline_mode = #tpu.pipeline_mode<synchronous>, transform_indices = @transform_9, window_bounds = array<i64: 2, 32, 64>}, {pipeline_mode = #tpu.pipeline_mode<synchronous>, transform_indices = @transform_10, window_bounds = array<i64: 2, 1, 64>}, {pipeline_mode = #tpu.pipeline_mode<synchronous>, transform_indices = @transform_11, window_bounds = array<i64: 2, 64, 32>}, {pipeline_mode = #tpu.pipeline_mode<synchronous>, transform_indices = @transform_12, window_bounds = array<i64: 2, 1, 32>}, {pipeline_mode = #tpu.pipeline_mode<synchronous>, transform_indices = @transform_13, window_bounds = array<i64: 2, 1, 32>}, {pipeline_mode = #tpu.pipeline_mode<synchronous>, transform_indices = @transform_14, window_bounds = array<i64: 2, 1, 32>}, {transform_indices = @transform_15, window_bounds = array<i64: 1, 1, 32>}]} {
    %c0 = arith.constant 0 : index
    %c0_0 = arith.constant 0 : index
    %c0_1 = arith.constant 0 : index
    %0 = vector.load %arg1[%c0, %c0_0, %c0_1] : memref<1x8x32xf32, #tpu.memory_space<vmem>>, vector<1x8x32xf32>
    %1 = vector.shape_cast %0 : vector<1x8x32xf32> to vector<8x32xf32>
    %c0_2 = arith.constant 0 : index
    %c0_3 = arith.constant 0 : index
    %2 = vector.load %arg2[%c0_2, %c0_3] : memref<1x32xf32, #tpu.memory_space<vmem>>, vector<1x32xf32>
    %c0_4 = arith.constant 0 : index
    %c0_5 = arith.constant 0 : index
    %3 = vector.load %arg3[%c0_4, %c0_5] : memref<1x32xf32, #tpu.memory_space<vmem>>, vector<1x32xf32>
    %cst = arith.constant dense<0.000000e+00> : vector<8xf32>
    %4 = vector.multi_reduction <add>, %1, %cst [1] : vector<8x32xf32> to vector<8xf32>
    %5 = vector.shape_cast %4 : vector<8xf32> to vector<8x1xf32>
    %cst_6 = arith.constant 3.200000e+01 : f32
    %6 = vector.broadcast %cst_6 : f32 to vector<8x1xf32>
    %7 = arith.divf %5, %6 : vector<8x1xf32>
    %8 = vector.broadcast %7 : vector<8x1xf32> to vector<8x32xf32>
    %9 = arith.subf %1, %8 : vector<8x32xf32>
    %10 = arith.mulf %9, %9 : vector<8x32xf32>
    %cst_7 = arith.constant dense<0.000000e+00> : vector<8xf32>
    %11 = vector.multi_reduction <add>, %10, %cst_7 [1] : vector<8x32xf32> to vector<8xf32>
    %12 = vector.shape_cast %11 : vector<8xf32> to vector<8x1xf32>
    %cst_8 = arith.constant 3.200000e+01 : f32
    %13 = vector.broadcast %cst_8 : f32 to vector<8x1xf32>
    %14 = arith.divf %12, %13 : vector<8x1xf32>
    %cst_9 = arith.constant 9.99999996E-13 : f32
    %15 = vector.broadcast %cst_9 : f32 to vector<8x1xf32>
    %16 = arith.addf %14, %15 : vector<8x1xf32>
    %17 = math.rsqrt %16 : vector<8x1xf32>
    %18 = vector.broadcast %17 : vector<8x1xf32> to vector<8x32xf32>
    %19 = arith.mulf %9, %18 : vector<8x32xf32>
    %20 = vector.broadcast %2 : vector<1x32xf32> to vector<8x32xf32>
    %21 = arith.mulf %19, %20 : vector<8x32xf32>
    %22 = vector.broadcast %3 : vector<1x32xf32> to vector<8x32xf32>
    %23 = arith.addf %21, %22 : vector<8x32xf32>
    %c0_10 = arith.constant 0 : index
    %c0_11 = arith.constant 0 : index
    %c0_12 = arith.constant 0 : index
    %24 = vector.load %arg4[%c0_10, %c0_11, %c0_12] : memref<2x32x96xf32, #tpu.memory_space<vmem>>, vector<1x32x96xf32>
    %25 = vector.shape_cast %24 : vector<1x32x96xf32> to vector<32x96xf32>
    %cst_13 = arith.constant dense<0.000000e+00> : vector<8x96xf32>
    %26 = tpu.matmul %23, %25, %cst_13 {dimension_numbers = #tpu.dot_dimension_numbers<[1], [0], [0], [1], [0, 0, 1, 1], [], []>} : vector<8x32xf32>, vector<32x96xf32>, vector<8x96xf32> -> vector<8x96xf32>
    %c0_14 = arith.constant 0 : index
    %c0_15 = arith.constant 0 : index
    %c0_16 = arith.constant 0 : index
    %27 = vector.load %arg5[%c0_14, %c0_15, %c0_16] : memref<2x1x96xf32, #tpu.memory_space<vmem>>, vector<1x1x96xf32>
    %28 = vector.shape_cast %27 : vector<1x1x96xf32> to vector<1x96xf32>
    %29 = vector.broadcast %28 : vector<1x96xf32> to vector<8x96xf32>
    %30 = arith.addf %26, %29 : vector<8x96xf32>
    %31 = vector.extract_strided_slice %30 {offsets = [0, 0], sizes = [8, 32], strides = [1, 1]} : vector<8x96xf32> to vector<8x32xf32>
    %32 = vector.extract_strided_slice %30 {offsets = [0, 32], sizes = [8, 32], strides = [1, 1]} : vector<8x96xf32> to vector<8x32xf32>
    %33 = vector.extract_strided_slice %30 {offsets = [0, 64], sizes = [8, 32], strides = [1, 1]} : vector<8x96xf32> to vector<8x32xf32>
    %34 = vector.extract_strided_slice %31 {offsets = [0, 0], sizes = [8, 8], strides = [1, 1]} : vector<8x32xf32> to vector<8x8xf32>
    %35 = vector.extract_strided_slice %32 {offsets = [0, 0], sizes = [8, 8], strides = [1, 1]} : vector<8x32xf32> to vector<8x8xf32>
    %36 = vector.extract_strided_slice %33 {offsets = [0, 0], sizes = [8, 8], strides = [1, 1]} : vector<8x32xf32> to vector<8x8xf32>
    %cst_17 = arith.constant dense<0.000000e+00> : vector<8x8xf32>
    %37 = tpu.matmul %34, %35, %cst_17 {dimension_numbers = #tpu.dot_dimension_numbers<[1], [1], [0], [0], [0, 0, 1, 0], [], []>} : vector<8x8xf32>, vector<8x8xf32>, vector<8x8xf32> -> vector<8x8xf32>
    %cst_18 = arith.constant 0.353553385 : f32
    %38 = vector.broadcast %cst_18 : f32 to vector<8x8xf32>
    %39 = arith.mulf %37, %38 : vector<8x8xf32>
    %cst_19 = arith.constant dense<0xFF800000> : vector<8xf32>
    %40 = vector.multi_reduction <maximumf>, %39, %cst_19 [1] : vector<8x8xf32> to vector<8xf32>
    %41 = vector.shape_cast %40 : vector<8xf32> to vector<8x1xf32>
    %42 = vector.broadcast %41 : vector<8x1xf32> to vector<8x8xf32>
    %43 = arith.subf %39, %42 : vector<8x8xf32>
    %44 = math.exp %43 : vector<8x8xf32>
    %cst_20 = arith.constant dense<0.000000e+00> : vector<8xf32>
    %45 = vector.multi_reduction <add>, %44, %cst_20 [1] : vector<8x8xf32> to vector<8xf32>
    %46 = vector.shape_cast %45 : vector<8xf32> to vector<8x1xf32>
    %47 = tpu.reciprocal %46 {approx = true} : vector<8x1xf32> -> vector<8x1xf32>
    %48 = vector.broadcast %47 : vector<8x1xf32> to vector<8x8xf32>
    %49 = arith.mulf %44, %48 : vector<8x8xf32>
    %cst_21 = arith.constant dense<0.000000e+00> : vector<8x8xf32>
    %50 = tpu.matmul %49, %36, %cst_21 {dimension_numbers = #tpu.dot_dimension_numbers<[1], [0], [0], [1], [0, 0, 1, 1], [], []>} : vector<8x8xf32>, vector<8x8xf32>, vector<8x8xf32> -> vector<8x8xf32>
    %51 = vector.extract_strided_slice %31 {offsets = [0, 8], sizes = [8, 8], strides = [1, 1]} : vector<8x32xf32> to vector<8x8xf32>
    %52 = vector.extract_strided_slice %32 {offsets = [0, 8], sizes = [8, 8], strides = [1, 1]} : vector<8x32xf32> to vector<8x8xf32>
    %53 = vector.extract_strided_slice %33 {offsets = [0, 8], sizes = [8, 8], strides = [1, 1]} : vector<8x32xf32> to vector<8x8xf32>
    %cst_22 = arith.constant dense<0.000000e+00> : vector<8x8xf32>
    %54 = tpu.matmul %51, %52, %cst_22 {dimension_numbers = #tpu.dot_dimension_numbers<[1], [1], [0], [0], [0, 0, 1, 0], [], []>} : vector<8x8xf32>, vector<8x8xf32>, vector<8x8xf32> -> vector<8x8xf32>
    %cst_23 = arith.constant 0.353553385 : f32
    %55 = vector.broadcast %cst_23 : f32 to vector<8x8xf32>
    %56 = arith.mulf %54, %55 : vector<8x8xf32>
    %cst_24 = arith.constant dense<0xFF800000> : vector<8xf32>
    %57 = vector.multi_reduction <maximumf>, %56, %cst_24 [1] : vector<8x8xf32> to vector<8xf32>
    %58 = vector.shape_cast %57 : vector<8xf32> to vector<8x1xf32>
    %59 = vector.broadcast %58 : vector<8x1xf32> to vector<8x8xf32>
    %60 = arith.subf %56, %59 : vector<8x8xf32>
    %61 = math.exp %60 : vector<8x8xf32>
    %cst_25 = arith.constant dense<0.000000e+00> : vector<8xf32>
    %62 = vector.multi_reduction <add>, %61, %cst_25 [1] : vector<8x8xf32> to vector<8xf32>
    %63 = vector.shape_cast %62 : vector<8xf32> to vector<8x1xf32>
    %64 = tpu.reciprocal %63 {approx = true} : vector<8x1xf32> -> vector<8x1xf32>
    %65 = vector.broadcast %64 : vector<8x1xf32> to vector<8x8xf32>
    %66 = arith.mulf %61, %65 : vector<8x8xf32>
    %cst_26 = arith.constant dense<0.000000e+00> : vector<8x8xf32>
    %67 = tpu.matmul %66, %53, %cst_26 {dimension_numbers = #tpu.dot_dimension_numbers<[1], [0], [0], [1], [0, 0, 1, 1], [], []>} : vector<8x8xf32>, vector<8x8xf32>, vector<8x8xf32> -> vector<8x8xf32>
    %68 = vector.extract_strided_slice %31 {offsets = [0, 16], sizes = [8, 8], strides = [1, 1]} : vector<8x32xf32> to vector<8x8xf32>
    %69 = vector.extract_strided_slice %32 {offsets = [0, 16], sizes = [8, 8], strides = [1, 1]} : vector<8x32xf32> to vector<8x8xf32>
    %70 = vector.extract_strided_slice %33 {offsets = [0, 16], sizes = [8, 8], strides = [1, 1]} : vector<8x32xf32> to vector<8x8xf32>
    %cst_27 = arith.constant dense<0.000000e+00> : vector<8x8xf32>
    %71 = tpu.matmul %68, %69, %cst_27 {dimension_numbers = #tpu.dot_dimension_numbers<[1], [1], [0], [0], [0, 0, 1, 0], [], []>} : vector<8x8xf32>, vector<8x8xf32>, vector<8x8xf32> -> vector<8x8xf32>
    %cst_28 = arith.constant 0.353553385 : f32
    %72 = vector.broadcast %cst_28 : f32 to vector<8x8xf32>
    %73 = arith.mulf %71, %72 : vector<8x8xf32>
    %cst_29 = arith.constant dense<0xFF800000> : vector<8xf32>
    %74 = vector.multi_reduction <maximumf>, %73, %cst_29 [1] : vector<8x8xf32> to vector<8xf32>
    %75 = vector.shape_cast %74 : vector<8xf32> to vector<8x1xf32>
    %76 = vector.broadcast %75 : vector<8x1xf32> to vector<8x8xf32>
    %77 = arith.subf %73, %76 : vector<8x8xf32>
    %78 = math.exp %77 : vector<8x8xf32>
    %cst_30 = arith.constant dense<0.000000e+00> : vector<8xf32>
    %79 = vector.multi_reduction <add>, %78, %cst_30 [1] : vector<8x8xf32> to vector<8xf32>
    %80 = vector.shape_cast %79 : vector<8xf32> to vector<8x1xf32>
    %81 = tpu.reciprocal %80 {approx = true} : vector<8x1xf32> -> vector<8x1xf32>
    %82 = vector.broadcast %81 : vector<8x1xf32> to vector<8x8xf32>
    %83 = arith.mulf %78, %82 : vector<8x8xf32>
    %cst_31 = arith.constant dense<0.000000e+00> : vector<8x8xf32>
    %84 = tpu.matmul %83, %70, %cst_31 {dimension_numbers = #tpu.dot_dimension_numbers<[1], [0], [0], [1], [0, 0, 1, 1], [], []>} : vector<8x8xf32>, vector<8x8xf32>, vector<8x8xf32> -> vector<8x8xf32>
    %85 = vector.extract_strided_slice %31 {offsets = [0, 24], sizes = [8, 8], strides = [1, 1]} : vector<8x32xf32> to vector<8x8xf32>
    %86 = vector.extract_strided_slice %32 {offsets = [0, 24], sizes = [8, 8], strides = [1, 1]} : vector<8x32xf32> to vector<8x8xf32>
    %87 = vector.extract_strided_slice %33 {offsets = [0, 24], sizes = [8, 8], strides = [1, 1]} : vector<8x32xf32> to vector<8x8xf32>
    %cst_32 = arith.constant dense<0.000000e+00> : vector<8x8xf32>
    %88 = tpu.matmul %85, %86, %cst_32 {dimension_numbers = #tpu.dot_dimension_numbers<[1], [1], [0], [0], [0, 0, 1, 0], [], []>} : vector<8x8xf32>, vector<8x8xf32>, vector<8x8xf32> -> vector<8x8xf32>
    %cst_33 = arith.constant 0.353553385 : f32
    %89 = vector.broadcast %cst_33 : f32 to vector<8x8xf32>
    %90 = arith.mulf %88, %89 : vector<8x8xf32>
    %cst_34 = arith.constant dense<0xFF800000> : vector<8xf32>
    %91 = vector.multi_reduction <maximumf>, %90, %cst_34 [1] : vector<8x8xf32> to vector<8xf32>
    %92 = vector.shape_cast %91 : vector<8xf32> to vector<8x1xf32>
    %93 = vector.broadcast %92 : vector<8x1xf32> to vector<8x8xf32>
    %94 = arith.subf %90, %93 : vector<8x8xf32>
    %95 = math.exp %94 : vector<8x8xf32>
    %cst_35 = arith.constant dense<0.000000e+00> : vector<8xf32>
    %96 = vector.multi_reduction <add>, %95, %cst_35 [1] : vector<8x8xf32> to vector<8xf32>
    %97 = vector.shape_cast %96 : vector<8xf32> to vector<8x1xf32>
    %98 = tpu.reciprocal %97 {approx = true} : vector<8x1xf32> -> vector<8x1xf32>
    %99 = vector.broadcast %98 : vector<8x1xf32> to vector<8x8xf32>
    %100 = arith.mulf %95, %99 : vector<8x8xf32>
    %cst_36 = arith.constant dense<0.000000e+00> : vector<8x8xf32>
    %101 = tpu.matmul %100, %87, %cst_36 {dimension_numbers = #tpu.dot_dimension_numbers<[1], [0], [0], [1], [0, 0, 1, 1], [], []>} : vector<8x8xf32>, vector<8x8xf32>, vector<8x8xf32> -> vector<8x8xf32>
    %102 = tpu.concatenate %50, %67, %84, %101 in 1 : vector<8x8xf32>, vector<8x8xf32>, vector<8x8xf32>, vector<8x8xf32> -> vector<8x32xf32>
    %c0_37 = arith.constant 0 : index
    %c0_38 = arith.constant 0 : index
    %c0_39 = arith.constant 0 : index
    %103 = vector.load %arg6[%c0_37, %c0_38, %c0_39] : memref<2x32x32xf32, #tpu.memory_space<vmem>>, vector<1x32x32xf32>
    %104 = vector.shape_cast %103 : vector<1x32x32xf32> to vector<32x32xf32>
    %cst_40 = arith.constant dense<0.000000e+00> : vector<8x32xf32>
    %105 = tpu.matmul %102, %104, %cst_40 {dimension_numbers = #tpu.dot_dimension_numbers<[1], [0], [0], [1], [0, 0, 1, 1], [], []>} : vector<8x32xf32>, vector<32x32xf32>, vector<8x32xf32> -> vector<8x32xf32>
    %c0_41 = arith.constant 0 : index
    %c0_42 = arith.constant 0 : index
    %c0_43 = arith.constant 0 : index
    %106 = vector.load %arg7[%c0_41, %c0_42, %c0_43] : memref<2x1x32xf32, #tpu.memory_space<vmem>>, vector<1x1x32xf32>
    %107 = vector.shape_cast %106 : vector<1x1x32xf32> to vector<1x32xf32>
    %108 = vector.broadcast %107 : vector<1x32xf32> to vector<8x32xf32>
    %109 = arith.addf %105, %108 : vector<8x32xf32>
    %110 = arith.addf %23, %109 : vector<8x32xf32>
    %c0_44 = arith.constant 0 : index
    %c0_45 = arith.constant 0 : index
    %c0_46 = arith.constant 0 : index
    %111 = vector.load %arg8[%c0_44, %c0_45, %c0_46] : memref<2x1x32xf32, #tpu.memory_space<vmem>>, vector<1x1x32xf32>
    %112 = vector.shape_cast %111 : vector<1x1x32xf32> to vector<1x32xf32>
    %c0_47 = arith.constant 0 : index
    %c0_48 = arith.constant 0 : index
    %c0_49 = arith.constant 0 : index
    %113 = vector.load %arg9[%c0_47, %c0_48, %c0_49] : memref<2x1x32xf32, #tpu.memory_space<vmem>>, vector<1x1x32xf32>
    %114 = vector.shape_cast %113 : vector<1x1x32xf32> to vector<1x32xf32>
    %cst_50 = arith.constant dense<0.000000e+00> : vector<8xf32>
    %115 = vector.multi_reduction <add>, %110, %cst_50 [1] : vector<8x32xf32> to vector<8xf32>
    %116 = vector.shape_cast %115 : vector<8xf32> to vector<8x1xf32>
    %cst_51 = arith.constant 3.200000e+01 : f32
    %117 = vector.broadcast %cst_51 : f32 to vector<8x1xf32>
    %118 = arith.divf %116, %117 : vector<8x1xf32>
    %119 = vector.broadcast %118 : vector<8x1xf32> to vector<8x32xf32>
    %120 = arith.subf %110, %119 : vector<8x32xf32>
    %121 = arith.mulf %120, %120 : vector<8x32xf32>
    %cst_52 = arith.constant dense<0.000000e+00> : vector<8xf32>
    %122 = vector.multi_reduction <add>, %121, %cst_52 [1] : vector<8x32xf32> to vector<8xf32>
    %123 = vector.shape_cast %122 : vector<8xf32> to vector<8x1xf32>
    %cst_53 = arith.constant 3.200000e+01 : f32
    %124 = vector.broadcast %cst_53 : f32 to vector<8x1xf32>
    %125 = arith.divf %123, %124 : vector<8x1xf32>
    %cst_54 = arith.constant 9.99999996E-13 : f32
    %126 = vector.broadcast %cst_54 : f32 to vector<8x1xf32>
    %127 = arith.addf %125, %126 : vector<8x1xf32>
    %128 = math.rsqrt %127 : vector<8x1xf32>
    %129 = vector.broadcast %128 : vector<8x1xf32> to vector<8x32xf32>
    %130 = arith.mulf %120, %129 : vector<8x32xf32>
    %131 = vector.broadcast %112 : vector<1x32xf32> to vector<8x32xf32>
    %132 = arith.mulf %130, %131 : vector<8x32xf32>
    %133 = vector.broadcast %114 : vector<1x32xf32> to vector<8x32xf32>
    %134 = arith.addf %132, %133 : vector<8x32xf32>
    %c0_55 = arith.constant 0 : index
    %c0_56 = arith.constant 0 : index
    %c0_57 = arith.constant 0 : index
    %135 = vector.load %arg10[%c0_55, %c0_56, %c0_57] : memref<2x32x64xf32, #tpu.memory_space<vmem>>, vector<1x32x64xf32>
    %136 = vector.shape_cast %135 : vector<1x32x64xf32> to vector<32x64xf32>
    %cst_58 = arith.constant dense<0.000000e+00> : vector<8x64xf32>
    %137 = tpu.matmul %134, %136, %cst_58 {dimension_numbers = #tpu.dot_dimension_numbers<[1], [0], [0], [1], [0, 0, 1, 1], [], []>} : vector<8x32xf32>, vector<32x64xf32>, vector<8x64xf32> -> vector<8x64xf32>
    %c0_59 = arith.constant 0 : index
    %c0_60 = arith.constant 0 : index
    %c0_61 = arith.constant 0 : index
    %138 = vector.load %arg11[%c0_59, %c0_60, %c0_61] : memref<2x1x64xf32, #tpu.memory_space<vmem>>, vector<1x1x64xf32>
    %139 = vector.shape_cast %138 : vector<1x1x64xf32> to vector<1x64xf32>
    %140 = vector.broadcast %139 : vector<1x64xf32> to vector<8x64xf32>
    %141 = arith.addf %137, %140 : vector<8x64xf32>
    %cst_62 = arith.constant 5.000000e-01 : f32
    %142 = vector.broadcast %cst_62 : f32 to vector<8x64xf32>
    %143 = arith.mulf %142, %141 : vector<8x64xf32>
    %cst_63 = arith.constant 4.471500e-02 : f32
    %144 = vector.broadcast %cst_63 : f32 to vector<8x64xf32>
    %145 = arith.mulf %144, %141 : vector<8x64xf32>
    %146 = arith.mulf %145, %141 : vector<8x64xf32>
    %147 = arith.mulf %146, %141 : vector<8x64xf32>
    %148 = arith.addf %141, %147 : vector<8x64xf32>
    %cst_64 = arith.constant 0.797884583 : f32
    %149 = vector.broadcast %cst_64 : f32 to vector<8x64xf32>
    %150 = arith.mulf %149, %148 : vector<8x64xf32>
    %151 = math.tanh %150 : vector<8x64xf32>
    %cst_65 = arith.constant 1.000000e+00 : f32
    %152 = vector.broadcast %cst_65 : f32 to vector<8x64xf32>
    %153 = arith.addf %152, %151 : vector<8x64xf32>
    %154 = arith.mulf %143, %153 : vector<8x64xf32>
    %c0_66 = arith.constant 0 : index
    %c0_67 = arith.constant 0 : index
    %c0_68 = arith.constant 0 : index
    %155 = vector.load %arg12[%c0_66, %c0_67, %c0_68] : memref<2x64x32xf32, #tpu.memory_space<vmem>>, vector<1x64x32xf32>
    %156 = vector.shape_cast %155 : vector<1x64x32xf32> to vector<64x32xf32>
    %cst_69 = arith.constant dense<0.000000e+00> : vector<8x32xf32>
    %157 = tpu.matmul %154, %156, %cst_69 {dimension_numbers = #tpu.dot_dimension_numbers<[1], [0], [0], [1], [0, 0, 1, 1], [], []>} : vector<8x64xf32>, vector<64x32xf32>, vector<8x32xf32> -> vector<8x32xf32>
    %c0_70 = arith.constant 0 : index
    %c0_71 = arith.constant 0 : index
    %c0_72 = arith.constant 0 : index
    %158 = vector.load %arg13[%c0_70, %c0_71, %c0_72] : memref<2x1x32xf32, #tpu.memory_space<vmem>>, vector<1x1x32xf32>
    %159 = vector.shape_cast %158 : vector<1x1x32xf32> to vector<1x32xf32>
    %160 = vector.broadcast %159 : vector<1x32xf32> to vector<8x32xf32>
    %161 = arith.addf %157, %160 : vector<8x32xf32>
    %162 = arith.addf %134, %161 : vector<8x32xf32>
    %c0_73 = arith.constant 0 : index
    %c0_74 = arith.constant 0 : index
    %c0_75 = arith.constant 0 : index
    %163 = vector.load %arg14[%c0_73, %c0_74, %c0_75] : memref<2x1x32xf32, #tpu.memory_space<vmem>>, vector<1x1x32xf32>
    %164 = vector.shape_cast %163 : vector<1x1x32xf32> to vector<1x32xf32>
    %c0_76 = arith.constant 0 : index
    %c0_77 = arith.constant 0 : index
    %c0_78 = arith.constant 0 : index
    %165 = vector.load %arg15[%c0_76, %c0_77, %c0_78] : memref<2x1x32xf32, #tpu.memory_space<vmem>>, vector<1x1x32xf32>
    %166 = vector.shape_cast %165 : vector<1x1x32xf32> to vector<1x32xf32>
    %cst_79 = arith.constant dense<0.000000e+00> : vector<8xf32>
    %167 = vector.multi_reduction <add>, %162, %cst_79 [1] : vector<8x32xf32> to vector<8xf32>
    %168 = vector.shape_cast %167 : vector<8xf32> to vector<8x1xf32>
    %cst_80 = arith.constant 3.200000e+01 : f32
    %169 = vector.broadcast %cst_80 : f32 to vector<8x1xf32>
    %170 = arith.divf %168, %169 : vector<8x1xf32>
    %171 = vector.broadcast %170 : vector<8x1xf32> to vector<8x32xf32>
    %172 = arith.subf %162, %171 : vector<8x32xf32>
    %173 = arith.mulf %172, %172 : vector<8x32xf32>
    %cst_81 = arith.constant dense<0.000000e+00> : vector<8xf32>
    %174 = vector.multi_reduction <add>, %173, %cst_81 [1] : vector<8x32xf32> to vector<8xf32>
    %175 = vector.shape_cast %174 : vector<8xf32> to vector<8x1xf32>
    %cst_82 = arith.constant 3.200000e+01 : f32
    %176 = vector.broadcast %cst_82 : f32 to vector<8x1xf32>
    %177 = arith.divf %175, %176 : vector<8x1xf32>
    %cst_83 = arith.constant 9.99999996E-13 : f32
    %178 = vector.broadcast %cst_83 : f32 to vector<8x1xf32>
    %179 = arith.addf %177, %178 : vector<8x1xf32>
    %180 = math.rsqrt %179 : vector<8x1xf32>
    %181 = vector.broadcast %180 : vector<8x1xf32> to vector<8x32xf32>
    %182 = arith.mulf %172, %181 : vector<8x32xf32>
    %183 = vector.broadcast %164 : vector<1x32xf32> to vector<8x32xf32>
    %184 = arith.mulf %182, %183 : vector<8x32xf32>
    %185 = vector.broadcast %166 : vector<1x32xf32> to vector<8x32xf32>
    %186 = arith.addf %184, %185 : vector<8x32xf32>
    %c1 = arith.constant 1 : index
    %c0_84 = arith.constant 0 : index
    %c0_85 = arith.constant 0 : index
    %187 = vector.load %arg4[%c1, %c0_84, %c0_85] : memref<2x32x96xf32, #tpu.memory_space<vmem>>, vector<1x32x96xf32>
    %188 = vector.shape_cast %187 : vector<1x32x96xf32> to vector<32x96xf32>
    %cst_86 = arith.constant dense<0.000000e+00> : vector<8x96xf32>
    %189 = tpu.matmul %186, %188, %cst_86 {dimension_numbers = #tpu.dot_dimension_numbers<[1], [0], [0], [1], [0, 0, 1, 1], [], []>} : vector<8x32xf32>, vector<32x96xf32>, vector<8x96xf32> -> vector<8x96xf32>
    %c1_87 = arith.constant 1 : index
    %c0_88 = arith.constant 0 : index
    %c0_89 = arith.constant 0 : index
    %190 = vector.load %arg5[%c1_87, %c0_88, %c0_89] : memref<2x1x96xf32, #tpu.memory_space<vmem>>, vector<1x1x96xf32>
    %191 = vector.shape_cast %190 : vector<1x1x96xf32> to vector<1x96xf32>
    %192 = vector.broadcast %191 : vector<1x96xf32> to vector<8x96xf32>
    %193 = arith.addf %189, %192 : vector<8x96xf32>
    %194 = vector.extract_strided_slice %193 {offsets = [0, 0], sizes = [8, 32], strides = [1, 1]} : vector<8x96xf32> to vector<8x32xf32>
    %195 = vector.extract_strided_slice %193 {offsets = [0, 32], sizes = [8, 32], strides = [1, 1]} : vector<8x96xf32> to vector<8x32xf32>
    %196 = vector.extract_strided_slice %193 {offsets = [0, 64], sizes = [8, 32], strides = [1, 1]} : vector<8x96xf32> to vector<8x32xf32>
    %197 = vector.extract_strided_slice %194 {offsets = [0, 0], sizes = [8, 8], strides = [1, 1]} : vector<8x32xf32> to vector<8x8xf32>
    %198 = vector.extract_strided_slice %195 {offsets = [0, 0], sizes = [8, 8], strides = [1, 1]} : vector<8x32xf32> to vector<8x8xf32>
    %199 = vector.extract_strided_slice %196 {offsets = [0, 0], sizes = [8, 8], strides = [1, 1]} : vector<8x32xf32> to vector<8x8xf32>
    %cst_90 = arith.constant dense<0.000000e+00> : vector<8x8xf32>
    %200 = tpu.matmul %197, %198, %cst_90 {dimension_numbers = #tpu.dot_dimension_numbers<[1], [1], [0], [0], [0, 0, 1, 0], [], []>} : vector<8x8xf32>, vector<8x8xf32>, vector<8x8xf32> -> vector<8x8xf32>
    %cst_91 = arith.constant 0.353553385 : f32
    %201 = vector.broadcast %cst_91 : f32 to vector<8x8xf32>
    %202 = arith.mulf %200, %201 : vector<8x8xf32>
    %cst_92 = arith.constant dense<0xFF800000> : vector<8xf32>
    %203 = vector.multi_reduction <maximumf>, %202, %cst_92 [1] : vector<8x8xf32> to vector<8xf32>
    %204 = vector.shape_cast %203 : vector<8xf32> to vector<8x1xf32>
    %205 = vector.broadcast %204 : vector<8x1xf32> to vector<8x8xf32>
    %206 = arith.subf %202, %205 : vector<8x8xf32>
    %207 = math.exp %206 : vector<8x8xf32>
    %cst_93 = arith.constant dense<0.000000e+00> : vector<8xf32>
    %208 = vector.multi_reduction <add>, %207, %cst_93 [1] : vector<8x8xf32> to vector<8xf32>
    %209 = vector.shape_cast %208 : vector<8xf32> to vector<8x1xf32>
    %210 = tpu.reciprocal %209 {approx = true} : vector<8x1xf32> -> vector<8x1xf32>
    %211 = vector.broadcast %210 : vector<8x1xf32> to vector<8x8xf32>
    %212 = arith.mulf %207, %211 : vector<8x8xf32>
    %cst_94 = arith.constant dense<0.000000e+00> : vector<8x8xf32>
    %213 = tpu.matmul %212, %199, %cst_94 {dimension_numbers = #tpu.dot_dimension_numbers<[1], [0], [0], [1], [0, 0, 1, 1], [], []>} : vector<8x8xf32>, vector<8x8xf32>, vector<8x8xf32> -> vector<8x8xf32>
    %214 = vector.extract_strided_slice %194 {offsets = [0, 8], sizes = [8, 8], strides = [1, 1]} : vector<8x32xf32> to vector<8x8xf32>
    %215 = vector.extract_strided_slice %195 {offsets = [0, 8], sizes = [8, 8], strides = [1, 1]} : vector<8x32xf32> to vector<8x8xf32>
    %216 = vector.extract_strided_slice %196 {offsets = [0, 8], sizes = [8, 8], strides = [1, 1]} : vector<8x32xf32> to vector<8x8xf32>
    %cst_95 = arith.constant dense<0.000000e+00> : vector<8x8xf32>
    %217 = tpu.matmul %214, %215, %cst_95 {dimension_numbers = #tpu.dot_dimension_numbers<[1], [1], [0], [0], [0, 0, 1, 0], [], []>} : vector<8x8xf32>, vector<8x8xf32>, vector<8x8xf32> -> vector<8x8xf32>
    %cst_96 = arith.constant 0.353553385 : f32
    %218 = vector.broadcast %cst_96 : f32 to vector<8x8xf32>
    %219 = arith.mulf %217, %218 : vector<8x8xf32>
    %cst_97 = arith.constant dense<0xFF800000> : vector<8xf32>
    %220 = vector.multi_reduction <maximumf>, %219, %cst_97 [1] : vector<8x8xf32> to vector<8xf32>
    %221 = vector.shape_cast %220 : vector<8xf32> to vector<8x1xf32>
    %222 = vector.broadcast %221 : vector<8x1xf32> to vector<8x8xf32>
    %223 = arith.subf %219, %222 : vector<8x8xf32>
    %224 = math.exp %223 : vector<8x8xf32>
    %cst_98 = arith.constant dense<0.000000e+00> : vector<8xf32>
    %225 = vector.multi_reduction <add>, %224, %cst_98 [1] : vector<8x8xf32> to vector<8xf32>
    %226 = vector.shape_cast %225 : vector<8xf32> to vector<8x1xf32>
    %227 = tpu.reciprocal %226 {approx = true} : vector<8x1xf32> -> vector<8x1xf32>
    %228 = vector.broadcast %227 : vector<8x1xf32> to vector<8x8xf32>
    %229 = arith.mulf %224, %228 : vector<8x8xf32>
    %cst_99 = arith.constant dense<0.000000e+00> : vector<8x8xf32>
    %230 = tpu.matmul %229, %216, %cst_99 {dimension_numbers = #tpu.dot_dimension_numbers<[1], [0], [0], [1], [0, 0, 1, 1], [], []>} : vector<8x8xf32>, vector<8x8xf32>, vector<8x8xf32> -> vector<8x8xf32>
    %231 = vector.extract_strided_slice %194 {offsets = [0, 16], sizes = [8, 8], strides = [1, 1]} : vector<8x32xf32> to vector<8x8xf32>
    %232 = vector.extract_strided_slice %195 {offsets = [0, 16], sizes = [8, 8], strides = [1, 1]} : vector<8x32xf32> to vector<8x8xf32>
    %233 = vector.extract_strided_slice %196 {offsets = [0, 16], sizes = [8, 8], strides = [1, 1]} : vector<8x32xf32> to vector<8x8xf32>
    %cst_100 = arith.constant dense<0.000000e+00> : vector<8x8xf32>
    %234 = tpu.matmul %231, %232, %cst_100 {dimension_numbers = #tpu.dot_dimension_numbers<[1], [1], [0], [0], [0, 0, 1, 0], [], []>} : vector<8x8xf32>, vector<8x8xf32>, vector<8x8xf32> -> vector<8x8xf32>
    %cst_101 = arith.constant 0.353553385 : f32
    %235 = vector.broadcast %cst_101 : f32 to vector<8x8xf32>
    %236 = arith.mulf %234, %235 : vector<8x8xf32>
    %cst_102 = arith.constant dense<0xFF800000> : vector<8xf32>
    %237 = vector.multi_reduction <maximumf>, %236, %cst_102 [1] : vector<8x8xf32> to vector<8xf32>
    %238 = vector.shape_cast %237 : vector<8xf32> to vector<8x1xf32>
    %239 = vector.broadcast %238 : vector<8x1xf32> to vector<8x8xf32>
    %240 = arith.subf %236, %239 : vector<8x8xf32>
    %241 = math.exp %240 : vector<8x8xf32>
    %cst_103 = arith.constant dense<0.000000e+00> : vector<8xf32>
    %242 = vector.multi_reduction <add>, %241, %cst_103 [1] : vector<8x8xf32> to vector<8xf32>
    %243 = vector.shape_cast %242 : vector<8xf32> to vector<8x1xf32>
    %244 = tpu.reciprocal %243 {approx = true} : vector<8x1xf32> -> vector<8x1xf32>
    %245 = vector.broadcast %244 : vector<8x1xf32> to vector<8x8xf32>
    %246 = arith.mulf %241, %245 : vector<8x8xf32>
    %cst_104 = arith.constant dense<0.000000e+00> : vector<8x8xf32>
    %247 = tpu.matmul %246, %233, %cst_104 {dimension_numbers = #tpu.dot_dimension_numbers<[1], [0], [0], [1], [0, 0, 1, 1], [], []>} : vector<8x8xf32>, vector<8x8xf32>, vector<8x8xf32> -> vector<8x8xf32>
    %248 = vector.extract_strided_slice %194 {offsets = [0, 24], sizes = [8, 8], strides = [1, 1]} : vector<8x32xf32> to vector<8x8xf32>
    %249 = vector.extract_strided_slice %195 {offsets = [0, 24], sizes = [8, 8], strides = [1, 1]} : vector<8x32xf32> to vector<8x8xf32>
    %250 = vector.extract_strided_slice %196 {offsets = [0, 24], sizes = [8, 8], strides = [1, 1]} : vector<8x32xf32> to vector<8x8xf32>
    %cst_105 = arith.constant dense<0.000000e+00> : vector<8x8xf32>
    %251 = tpu.matmul %248, %249, %cst_105 {dimension_numbers = #tpu.dot_dimension_numbers<[1], [1], [0], [0], [0, 0, 1, 0], [], []>} : vector<8x8xf32>, vector<8x8xf32>, vector<8x8xf32> -> vector<8x8xf32>
    %cst_106 = arith.constant 0.353553385 : f32
    %252 = vector.broadcast %cst_106 : f32 to vector<8x8xf32>
    %253 = arith.mulf %251, %252 : vector<8x8xf32>
    %cst_107 = arith.constant dense<0xFF800000> : vector<8xf32>
    %254 = vector.multi_reduction <maximumf>, %253, %cst_107 [1] : vector<8x8xf32> to vector<8xf32>
    %255 = vector.shape_cast %254 : vector<8xf32> to vector<8x1xf32>
    %256 = vector.broadcast %255 : vector<8x1xf32> to vector<8x8xf32>
    %257 = arith.subf %253, %256 : vector<8x8xf32>
    %258 = math.exp %257 : vector<8x8xf32>
    %cst_108 = arith.constant dense<0.000000e+00> : vector<8xf32>
    %259 = vector.multi_reduction <add>, %258, %cst_108 [1] : vector<8x8xf32> to vector<8xf32>
    %260 = vector.shape_cast %259 : vector<8xf32> to vector<8x1xf32>
    %261 = tpu.reciprocal %260 {approx = true} : vector<8x1xf32> -> vector<8x1xf32>
    %262 = vector.broadcast %261 : vector<8x1xf32> to vector<8x8xf32>
    %263 = arith.mulf %258, %262 : vector<8x8xf32>
    %cst_109 = arith.constant dense<0.000000e+00> : vector<8x8xf32>
    %264 = tpu.matmul %263, %250, %cst_109 {dimension_numbers = #tpu.dot_dimension_numbers<[1], [0], [0], [1], [0, 0, 1, 1], [], []>} : vector<8x8xf32>, vector<8x8xf32>, vector<8x8xf32> -> vector<8x8xf32>
    %265 = tpu.concatenate %213, %230, %247, %264 in 1 : vector<8x8xf32>, vector<8x8xf32>, vector<8x8xf32>, vector<8x8xf32> -> vector<8x32xf32>
    %c1_110 = arith.constant 1 : index
    %c0_111 = arith.constant 0 : index
    %c0_112 = arith.constant 0 : index
    %266 = vector.load %arg6[%c1_110, %c0_111, %c0_112] : memref<2x32x32xf32, #tpu.memory_space<vmem>>, vector<1x32x32xf32>
    %267 = vector.shape_cast %266 : vector<1x32x32xf32> to vector<32x32xf32>
    %cst_113 = arith.constant dense<0.000000e+00> : vector<8x32xf32>
    %268 = tpu.matmul %265, %267, %cst_113 {dimension_numbers = #tpu.dot_dimension_numbers<[1], [0], [0], [1], [0, 0, 1, 1], [], []>} : vector<8x32xf32>, vector<32x32xf32>, vector<8x32xf32> -> vector<8x32xf32>
    %c1_114 = arith.constant 1 : index
    %c0_115 = arith.constant 0 : index
    %c0_116 = arith.constant 0 : index
    %269 = vector.load %arg7[%c1_114, %c0_115, %c0_116] : memref<2x1x32xf32, #tpu.memory_space<vmem>>, vector<1x1x32xf32>
    %270 = vector.shape_cast %269 : vector<1x1x32xf32> to vector<1x32xf32>
    %271 = vector.broadcast %270 : vector<1x32xf32> to vector<8x32xf32>
    %272 = arith.addf %268, %271 : vector<8x32xf32>
    %273 = arith.addf %186, %272 : vector<8x32xf32>
    %c1_117 = arith.constant 1 : index
    %c0_118 = arith.constant 0 : index
    %c0_119 = arith.constant 0 : index
    %274 = vector.load %arg8[%c1_117, %c0_118, %c0_119] : memref<2x1x32xf32, #tpu.memory_space<vmem>>, vector<1x1x32xf32>
    %275 = vector.shape_cast %274 : vector<1x1x32xf32> to vector<1x32xf32>
    %c1_120 = arith.constant 1 : index
    %c0_121 = arith.constant 0 : index
    %c0_122 = arith.constant 0 : index
    %276 = vector.load %arg9[%c1_120, %c0_121, %c0_122] : memref<2x1x32xf32, #tpu.memory_space<vmem>>, vector<1x1x32xf32>
    %277 = vector.shape_cast %276 : vector<1x1x32xf32> to vector<1x32xf32>
    %cst_123 = arith.constant dense<0.000000e+00> : vector<8xf32>
    %278 = vector.multi_reduction <add>, %273, %cst_123 [1] : vector<8x32xf32> to vector<8xf32>
    %279 = vector.shape_cast %278 : vector<8xf32> to vector<8x1xf32>
    %cst_124 = arith.constant 3.200000e+01 : f32
    %280 = vector.broadcast %cst_124 : f32 to vector<8x1xf32>
    %281 = arith.divf %279, %280 : vector<8x1xf32>
    %282 = vector.broadcast %281 : vector<8x1xf32> to vector<8x32xf32>
    %283 = arith.subf %273, %282 : vector<8x32xf32>
    %284 = arith.mulf %283, %283 : vector<8x32xf32>
    %cst_125 = arith.constant dense<0.000000e+00> : vector<8xf32>
    %285 = vector.multi_reduction <add>, %284, %cst_125 [1] : vector<8x32xf32> to vector<8xf32>
    %286 = vector.shape_cast %285 : vector<8xf32> to vector<8x1xf32>
    %cst_126 = arith.constant 3.200000e+01 : f32
    %287 = vector.broadcast %cst_126 : f32 to vector<8x1xf32>
    %288 = arith.divf %286, %287 : vector<8x1xf32>
    %cst_127 = arith.constant 9.99999996E-13 : f32
    %289 = vector.broadcast %cst_127 : f32 to vector<8x1xf32>
    %290 = arith.addf %288, %289 : vector<8x1xf32>
    %291 = math.rsqrt %290 : vector<8x1xf32>
    %292 = vector.broadcast %291 : vector<8x1xf32> to vector<8x32xf32>
    %293 = arith.mulf %283, %292 : vector<8x32xf32>
    %294 = vector.broadcast %275 : vector<1x32xf32> to vector<8x32xf32>
    %295 = arith.mulf %293, %294 : vector<8x32xf32>
    %296 = vector.broadcast %277 : vector<1x32xf32> to vector<8x32xf32>
    %297 = arith.addf %295, %296 : vector<8x32xf32>
    %c1_128 = arith.constant 1 : index
    %c0_129 = arith.constant 0 : index
    %c0_130 = arith.constant 0 : index
    %298 = vector.load %arg10[%c1_128, %c0_129, %c0_130] : memref<2x32x64xf32, #tpu.memory_space<vmem>>, vector<1x32x64xf32>
    %299 = vector.shape_cast %298 : vector<1x32x64xf32> to vector<32x64xf32>
    %cst_131 = arith.constant dense<0.000000e+00> : vector<8x64xf32>
    %300 = tpu.matmul %297, %299, %cst_131 {dimension_numbers = #tpu.dot_dimension_numbers<[1], [0], [0], [1], [0, 0, 1, 1], [], []>} : vector<8x32xf32>, vector<32x64xf32>, vector<8x64xf32> -> vector<8x64xf32>
    %c1_132 = arith.constant 1 : index
    %c0_133 = arith.constant 0 : index
    %c0_134 = arith.constant 0 : index
    %301 = vector.load %arg11[%c1_132, %c0_133, %c0_134] : memref<2x1x64xf32, #tpu.memory_space<vmem>>, vector<1x1x64xf32>
    %302 = vector.shape_cast %301 : vector<1x1x64xf32> to vector<1x64xf32>
    %303 = vector.broadcast %302 : vector<1x64xf32> to vector<8x64xf32>
    %304 = arith.addf %300, %303 : vector<8x64xf32>
    %cst_135 = arith.constant 5.000000e-01 : f32
    %305 = vector.broadcast %cst_135 : f32 to vector<8x64xf32>
    %306 = arith.mulf %305, %304 : vector<8x64xf32>
    %cst_136 = arith.constant 4.471500e-02 : f32
    %307 = vector.broadcast %cst_136 : f32 to vector<8x64xf32>
    %308 = arith.mulf %307, %304 : vector<8x64xf32>
    %309 = arith.mulf %308, %304 : vector<8x64xf32>
    %310 = arith.mulf %309, %304 : vector<8x64xf32>
    %311 = arith.addf %304, %310 : vector<8x64xf32>
    %cst_137 = arith.constant 0.797884583 : f32
    %312 = vector.broadcast %cst_137 : f32 to vector<8x64xf32>
    %313 = arith.mulf %312, %311 : vector<8x64xf32>
    %314 = math.tanh %313 : vector<8x64xf32>
    %cst_138 = arith.constant 1.000000e+00 : f32
    %315 = vector.broadcast %cst_138 : f32 to vector<8x64xf32>
    %316 = arith.addf %315, %314 : vector<8x64xf32>
    %317 = arith.mulf %306, %316 : vector<8x64xf32>
    %c1_139 = arith.constant 1 : index
    %c0_140 = arith.constant 0 : index
    %c0_141 = arith.constant 0 : index
    %318 = vector.load %arg12[%c1_139, %c0_140, %c0_141] : memref<2x64x32xf32, #tpu.memory_space<vmem>>, vector<1x64x32xf32>
    %319 = vector.shape_cast %318 : vector<1x64x32xf32> to vector<64x32xf32>
    %cst_142 = arith.constant dense<0.000000e+00> : vector<8x32xf32>
    %320 = tpu.matmul %317, %319, %cst_142 {dimension_numbers = #tpu.dot_dimension_numbers<[1], [0], [0], [1], [0, 0, 1, 1], [], []>} : vector<8x64xf32>, vector<64x32xf32>, vector<8x32xf32> -> vector<8x32xf32>
    %c1_143 = arith.constant 1 : index
    %c0_144 = arith.constant 0 : index
    %c0_145 = arith.constant 0 : index
    %321 = vector.load %arg13[%c1_143, %c0_144, %c0_145] : memref<2x1x32xf32, #tpu.memory_space<vmem>>, vector<1x1x32xf32>
    %322 = vector.shape_cast %321 : vector<1x1x32xf32> to vector<1x32xf32>
    %323 = vector.broadcast %322 : vector<1x32xf32> to vector<8x32xf32>
    %324 = arith.addf %320, %323 : vector<8x32xf32>
    %325 = arith.addf %297, %324 : vector<8x32xf32>
    %c1_146 = arith.constant 1 : index
    %c0_147 = arith.constant 0 : index
    %c0_148 = arith.constant 0 : index
    %326 = vector.load %arg14[%c1_146, %c0_147, %c0_148] : memref<2x1x32xf32, #tpu.memory_space<vmem>>, vector<1x1x32xf32>
    %327 = vector.shape_cast %326 : vector<1x1x32xf32> to vector<1x32xf32>
    %c1_149 = arith.constant 1 : index
    %c0_150 = arith.constant 0 : index
    %c0_151 = arith.constant 0 : index
    %328 = vector.load %arg15[%c1_149, %c0_150, %c0_151] : memref<2x1x32xf32, #tpu.memory_space<vmem>>, vector<1x1x32xf32>
    %329 = vector.shape_cast %328 : vector<1x1x32xf32> to vector<1x32xf32>
    %cst_152 = arith.constant dense<0.000000e+00> : vector<8xf32>
    %330 = vector.multi_reduction <add>, %325, %cst_152 [1] : vector<8x32xf32> to vector<8xf32>
    %331 = vector.shape_cast %330 : vector<8xf32> to vector<8x1xf32>
    %cst_153 = arith.constant 3.200000e+01 : f32
    %332 = vector.broadcast %cst_153 : f32 to vector<8x1xf32>
    %333 = arith.divf %331, %332 : vector<8x1xf32>
    %334 = vector.broadcast %333 : vector<8x1xf32> to vector<8x32xf32>
    %335 = arith.subf %325, %334 : vector<8x32xf32>
    %336 = arith.mulf %335, %335 : vector<8x32xf32>
    %cst_154 = arith.constant dense<0.000000e+00> : vector<8xf32>
    %337 = vector.multi_reduction <add>, %336, %cst_154 [1] : vector<8x32xf32> to vector<8xf32>
    %338 = vector.shape_cast %337 : vector<8xf32> to vector<8x1xf32>
    %cst_155 = arith.constant 3.200000e+01 : f32
    %339 = vector.broadcast %cst_155 : f32 to vector<8x1xf32>
    %340 = arith.divf %338, %339 : vector<8x1xf32>
    %cst_156 = arith.constant 9.99999996E-13 : f32
    %341 = vector.broadcast %cst_156 : f32 to vector<8x1xf32>
    %342 = arith.addf %340, %341 : vector<8x1xf32>
    %343 = math.rsqrt %342 : vector<8x1xf32>
    %344 = vector.broadcast %343 : vector<8x1xf32> to vector<8x32xf32>
    %345 = arith.mulf %335, %344 : vector<8x32xf32>
    %346 = vector.broadcast %327 : vector<1x32xf32> to vector<8x32xf32>
    %347 = arith.mulf %345, %346 : vector<8x32xf32>
    %348 = vector.broadcast %329 : vector<1x32xf32> to vector<8x32xf32>
    %349 = arith.addf %347, %348 : vector<8x32xf32>
    %350 = vector.extract_strided_slice %349 {offsets = [0, 0], sizes = [1, 32], strides = [1, 1]} : vector<8x32xf32> to vector<1x32xf32>
    %c0_157 = arith.constant 0 : index
    %c0_158 = arith.constant 0 : index
    %c0_159 = arith.constant 0 : index
    %351 = vector.load %arg16[%c0_157, %c0_158, %c0_159] : memref<1x1x32xf32, #tpu.memory_space<vmem>>, vector<1x1x32xf32>
    %352 = vector.shape_cast %351 : vector<1x1x32xf32> to vector<1x32xf32>
    %353 = vector.shape_cast %350 : vector<1x32xf32> to vector<1x1x32xf32>
    tpu.vector_store %arg16[%c0_157, %c0_158, %c0_159], %353 {strides = array<i32>} : memref<1x1x32xf32, #tpu.memory_space<vmem>>, vector<1x1x32xf32>,
    return
  }
  func.func @transform_0(%arg0: i32) -> (i32, i32, i32) {
    %c0_i32 = arith.constant 0 : i32
    %c0_i32_0 = arith.constant 0 : i32
    %c0_i32_1 = arith.constant 0 : i32
    return %arg0, %c0_i32, %c0_i32_0 : i32, i32, i32
  }
  func.func @transform_1(%arg0: i32) -> (i32, i32) {
    %c0_i32 = arith.constant 0 : i32
    %c0_i32_0 = arith.constant 0 : i32
    %c0_i32_1 = arith.constant 0 : i32
    return %c0_i32, %c0_i32_0 : i32, i32
  }
  func.func @transform_2(%arg0: i32) -> (i32, i32) {
    %c0_i32 = arith.constant 0 : i32
    %c0_i32_0 = arith.constant 0 : i32
    %c0_i32_1 = arith.constant 0 : i32
    return %c0_i32, %c0_i32_0 : i32, i32
  }
  func.func @transform_3(%arg0: i32) -> (i32, i32, i32) {
    %c0_i32 = arith.constant 0 : i32
    %c0_i32_0 = arith.constant 0 : i32
    %c0_i32_1 = arith.constant 0 : i32
    %c0_i32_2 = arith.constant 0 : i32
    return %c0_i32, %c0_i32_0, %c0_i32_1 : i32, i32, i32
  }
  func.func @transform_4(%arg0: i32) -> (i32, i32, i32) {
    %c0_i32 = arith.constant 0 : i32
    %c0_i32_0 = arith.constant 0 : i32
    %c0_i32_1 = arith.constant 0 : i32
    %c0_i32_2 = arith.constant 0 : i32
    return %c0_i32, %c0_i32_0, %c0_i32_1 : i32, i32, i32
  }
  func.func @transform_5(%arg0: i32) -> (i32, i32, i32) {
    %c0_i32 = arith.constant 0 : i32
    %c0_i32_0 = arith.constant 0 : i32
    %c0_i32_1 = arith.constant 0 : i32
    %c0_i32_2 = arith.constant 0 : i32
    return %c0_i32, %c0_i32_0, %c0_i32_1 : i32, i32, i32
  }
  func.func @transform_6(%arg0: i32) -> (i32, i32, i32) {
    %c0_i32 = arith.constant 0 : i32
    %c0_i32_0 = arith.constant 0 : i32
    %c0_i32_1 = arith.constant 0 : i32
    %c0_i32_2 = arith.constant 0 : i32
    return %c0_i32, %c0_i32_0, %c0_i32_1 : i32, i32, i32
  }
  func.func @transform_7(%arg0: i32) -> (i32, i32, i32) {
    %c0_i32 = arith.constant 0 : i32
    %c0_i32_0 = arith.constant 0 : i32
    %c0_i32_1 = arith.constant 0 : i32
    %c0_i32_2 = arith.constant 0 : i32
    return %c0_i32, %c0_i32_0, %c0_i32_1 : i32, i32, i32
  }
  func.func @transform_8(%arg0: i32) -> (i32, i32, i32) {
    %c0_i32 = arith.constant 0 : i32
    %c0_i32_0 = arith.constant 0 : i32
    %c0_i32_1 = arith.constant 0 : i32
    %c0_i32_2 = arith.constant 0 : i32
    return %c0_i32, %c0_i32_0, %c0_i32_1 : i32, i32, i32
  }
  func.func @transform_9(%arg0: i32) -> (i32, i32, i32) {
    %c0_i32 = arith.constant 0 : i32
    %c0_i32_0 = arith.constant 0 : i32
    %c0_i32_1 = arith.constant 0 : i32
    %c0_i32_2 = arith.constant 0 : i32
    return %c0_i32, %c0_i32_0, %c0_i32_1 : i32, i32, i32
  }
  func.func @transform_10(%arg0: i32) -> (i32, i32, i32) {
    %c0_i32 = arith.constant 0 : i32
    %c0_i32_0 = arith.constant 0 : i32
    %c0_i32_1 = arith.constant 0 : i32
    %c0_i32_2 = arith.constant 0 : i32
    return %c0_i32, %c0_i32_0, %c0_i32_1 : i32, i32, i32
  }
  func.func @transform_11(%arg0: i32) -> (i32, i32, i32) {
    %c0_i32 = arith.constant 0 : i32
    %c0_i32_0 = arith.constant 0 : i32
    %c0_i32_1 = arith.constant 0 : i32
    %c0_i32_2 = arith.constant 0 : i32
    return %c0_i32, %c0_i32_0, %c0_i32_1 : i32, i32, i32
  }
  func.func @transform_12(%arg0: i32) -> (i32, i32, i32) {
    %c0_i32 = arith.constant 0 : i32
    %c0_i32_0 = arith.constant 0 : i32
    %c0_i32_1 = arith.constant 0 : i32
    %c0_i32_2 = arith.constant 0 : i32
    return %c0_i32, %c0_i32_0, %c0_i32_1 : i32, i32, i32
  }
  func.func @transform_13(%arg0: i32) -> (i32, i32, i32) {
    %c0_i32 = arith.constant 0 : i32
    %c0_i32_0 = arith.constant 0 : i32
    %c0_i32_1 = arith.constant 0 : i32
    %c0_i32_2 = arith.constant 0 : i32
    return %c0_i32, %c0_i32_0, %c0_i32_1 : i32, i32, i32
  }
  func.func @transform_14(%arg0: i32) -> (i32, i32, i32) {
    %c0_i32 = arith.constant 0 : i32
    %c0_i32_0 = arith.constant 0 : i32
    %c0_i32_1 = arith.constant 0 : i32
    %c0_i32_2 = arith.constant 0 : i32
    return %c0_i32, %c0_i32_0, %c0_i32_1 : i32, i32, i32
  }
  func.func @transform_15(%arg0: i32) -> (i32, i32, i32) {
    %c0_i32 = arith.constant 0 : i32
    %c0_i32_0 = arith.constant 0 : i32
    %c0_i32_1 = arith.constant 0 : i32
    return %arg0, %c0_i32, %c0_i32_0 : i32, i32, i32
  }
}

</mosaic_0001>

<bundles_post_ra>
// kernel: huggingface_model_forward.1
= control target key start
LH: loop header
LB: loop body
LE: loop exit
PB: predicated region body
PF: predicated region fallthrough
CT: control target
= control target key end

     0   :  { %s2329_s0 = inlined_call_operand.vmem [shape: f32[2,8,32], index: 0, kind: input, shape index: {}]   ;;  %s2330_s1 = inlined_call_operand.vmem [shape: f32[1,32], index: 1, kind: input, shape index: {}]   ;;  %s2331_s2 = inlined_call_operand.vmem [shape: f32[1,32], index: 2, kind: input, shape index: {}]   ;;  %s2332_s3 = inlined_call_operand.vmem [shape: f32[2,32,96], index: 3, kind: input, shape index: {}]   ;;  %s2333_s4 = inlined_call_operand.vmem [shape: f32[2,1,96], index: 4, kind: input, shape index: {}]   ;;  %s2334_s5 = inlined_call_operand.vmem [shape: f32[2,32,32], index: 5, kind: input, shape index: {}]   ;;  %s2335_s6 = inlined_call_operand.vmem [shape: f32[2,1,32], index: 6, kind: input, shape index: {}]   ;;  %s2336_s7 = inlined_call_operand.vmem [shape: f32[2,1,32], index: 7, kind: input, shape index: {}]   ;;  %s2337_s8 = inlined_call_operand.vmem [shape: f32[2,1,32], index: 8, kind: input, shape index: {}]   ;;  %s2338_s9 = inlined_call_operand.vmem [shape: f32[2,32,64], index: 9, kind: input, shape index: {}]   ;;  %s2339_s10 = inlined_call_operand.vmem [shape: f32[2,1,64], index: 10, kind: input, shape index: {}]   ;;  %s2340_s11 = inlined_call_operand.vmem [shape: f32[2,64,32], index: 11, kind: input, shape index: {}]   ;;  %s2341_s12 = inlined_call_operand.vmem [shape: f32[2,1,32], index: 12, kind: input, shape index: {}]   ;;  %s2342_s13 = inlined_call_operand.vmem [shape: f32[2,1,32], index: 13, kind: input, shape index: {}]   ;;  %s2343_s14 = inlined_call_operand.vmem [shape: f32[2,1,32], index: 14, kind: input, shape index: {}]   ;;  %s2344_s15 = inlined_call_operand.hbm [shape: f32[2,1,32], index: 15, kind: output, shape index: {}]  }
   0x1   :  { %2359 = sst [smem:[#allocation6_spill]] %s2329_s0 }
   0x2   :  { %2360 = sst [smem:[#allocation7_spill]] %s2330_s1 }
   0x3   :  { %2361 = sst [smem:[#allocation8_spill]] %s2331_s2 }
   0x4   :  { %2362 = sst [smem:[#allocation9_spill]] %s2332_s3 }
   0x5   :  { %20 = vsyncpa [#allocation3], 0 }
   0x6   :  { %22 = vsyncpa [#allocation3 + $0x1], 0  ;;  %s1924_s18 = smov 0   ;;  %s1926_s19 = smov 0  }
   0x7   :  { %s1928_s20 = smov 0   ;;  %s1930_s21 = smov 0  }
   0x8 LB: > { %s1945_s22 = sadd.s32 4294967295, %s1827_s21   ;;  %s1578_s23 = sadd.s32 4294967294, %s1827_s21   ;;  %s1827_s21 = sphi %s1930_s21, %s2388_s21   ;;  %s1823_s20 = sphi %s1928_s20, %s2387_s20   ;;  %s1819_s19 = sphi %s1926_s19, %s2386_s19   ;;  %s1815_s18 = sphi %s1924_s18, %s2385_s18  }
   0x9   : > { %s1949_s24 = sadd.s32 1, %s1827_s21   ;;  %s355_s25 = sadd.s32 1, %s1823_s20 }
   0xa   : > { %s352_s26 = ssub.s32 %s1827_s21, %s1949_s24  ;;  %p365_p0 = scmp.ne.s32.totalorder %s1823_s20, %s1819_s19 }
   0xb   : > { %p353_p1 = scmp.eq.s32.totalorder %s352_s26, 0  ;;  %p366_p2 = scmp.eq.s32.totalorder %s1945_s22, 1 }
   0xc   : > { %p371_p3 = scmp.ne.s32.totalorder %s1819_s19, %s1815_s18  ;;  %p372_p4 = scmp.eq.s32.totalorder %s1578_s23, 1 }
   0xd   : > { %s1960_s27 = scalar_select %p353_p1, %s1823_s20, %s355_s25  }
   0xe   : > { %p1962_p5 = por %p366_p2, %p365_p0  ;;  %p1966_p6 = por %p372_p4, %p371_p3 }
   0xf   : > { %2363 = sst [smem:[#allocation5_spill]] %s1960_s27  ;;  %p1581_p7 = scmp.ge.s32.totalorder %s1827_s21, 1 }
  0x10   : > { %p439_p8 = scmp.lt.s32.totalorder %s1827_s21, 3 }
  0x12   : > { %p440_p9 = pnand %p1581_p7, %p439_p8 }
  0x13   : > { %p485_p10 = scmp.lt.s32.totalorder (!%p440_p9), %s1945_s22, 1  ;;  %s2366_s0 = sld [smem:[#allocation6_spill]] (!%p440_p9) }
  0x14   : > { %443 = sbr.rel (%p440_p9) target bundleno = 4790 (0x12b6), region = 80  ;;  %s2367_s3 = sld [smem:[#allocation9_spill]] (!%p440_p9) }
  0x15   : > { %s2368_s1 = sld [smem:[#allocation7_spill]] (!%p440_p9)  ;;  %s2350_s23 = smov (!%p440_p9), 88  }
  0x16   : > { %s2369_s2 = sld [smem:[#allocation8_spill]] (!%p440_p9)  ;;  %s2355_s26 = smov (!%p440_p9), 96  }
  0x17   : > { %s2352_s27 = smov (!%p440_p9), 112   ;;  %s2346_s17 = smov (!%p440_p9), 48  }
  0x19   : > { %s486_s30 = scalar_select %p485_p10, %s1945_s22, 1  ;;  %vm492_vm0 = vcmask 261120   ;;  %v1829_v2 = vmov 32.0   ;;  %v1701_v33 = vld [vmem:[%s2333_s4] ss:$0 sm:$0xff]  ;;  %vm564_vm5 = vcmask 64512  }
  0x1a   : > { %1717 = vrcp.f32 %v1829_v2  ;;  %v533_v14 = vld [vmem:[%s2367_s3 + $0x18] sm:$0xff]  ;;  %v532_v15 = vld [vmem:[%s2367_s3 + $0x10] sm:$0xff]  ;;  %v531_v16 = vld [vmem:[%s2367_s3 + $0x8] sm:$0xff]  ;;  %vm838_vm6 = vcmask 130048   ;;  %vm840_vm7 = vcmask 195584   ;;  %vm958_vm11 = vcmask 523264  }
  0x1b   : > { %s1582_s16 = sshll.u32 %s486_s30, 3  ;;  %553 = vmatpush.msra.mxu0 %v533_v14  ;;  %v530_v17 = vld [vmem:[%s2367_s3] sm:$0xff]  ;;  %s2353_s30 = smov 80  }
  0x1c   : > { %s488_s25 = scalar_lea.vmem %s2366_s0, %s1582_s16  ;;  %v1699_v27 = vld [vmem:[%s2368_s1] ss:$0 sm:$0xff]  ;;  %s2354_s0 = smov 120  }
  0x1d   : > { %v489_v0 = vld [vmem:[%s488_s25] sm:$0xff]  ;;  %554 = vmatpush.msra.mxu0 %v532_v15  ;;  %s2356_s25 = smov 64   ;;  %s2345_s16 = smov 72  }
  0x1e   : > { %v493_v1 = vsel %vm492_vm0, %v489_v0, 0.0  ;;  %v1700_v30 = vld [vmem:[%s2369_s2] ss:$0 sm:$0xff]  ;;  %s2370_s1 = smov 64   ;;  %s2373_s2 = smov 80  }
  0x1f   : > { %494 = vadd.xlane.f32.xlu0 %v493_v1  ;;  %555 = vmatpush.msra.mxu0 %v531_v16 }
  0x20   : > { %v1718_v3 = vpop.eup %1717 }
  0x21   : > { %v497_v4 = vmul.f32 32.0, %v1718_v3  ;;  %vm501_vm1 = vweird.f32 %v1718_v3  ;;  %556 = vmatpush.msra.mxu0 %v530_v17 }
  0x23   : > { %v498_v5 = vsub.f32 1.0, %v497_v4 }
  0x25   : > { %v499_v6 = vmul.f32 %v1718_v3, %v498_v5 }
  0x27   : > { %v500_v7 = vadd.f32 %v1718_v3, %v499_v6 }
  0x29   : > { %v1978_v8 = vsel %vm501_vm1, %v1718_v3, %v500_v7 }
  0x92   : > { %v495_v9 = vpop.xlane.xlu0 %494 }
  0x93   : > { %v503_v10 = vmul.f32 %v1978_v8, %v495_v9 }
  0x95   : > { %v504_v11 = vsub.f32 %v489_v0, %v503_v10 }
  0x97   : > { %v505_v12 = vmul.f32 %v504_v11, %v504_v11 }
  0x99   : > { %v506_v13 = vsel %vm492_vm0, %v505_v12, 0.0 }
  0x9a   : > { %507 = vadd.xlane.f32.xlu0 %v506_v13 }
 0x10d   : > { %v508_v18 = vpop.xlane.xlu0 %507 }
 0x10e   : > { %v509_v19 = vmul.f32 %v508_v18, %v1978_v8 }
 0x110   : > { %v510_v20 = vadd.f32 1e-12, %v509_v19 }
 0x112   : > { %1719 = vrsqrt.f32 %v510_v20  ;;  %vm517_vm3 = vweird.f32 %v510_v20 }
 0x118   : > { %v1720_v21 = vpop.eup %1719 }
 0x119   : > { %v512_v22 = vmul.f32 %v1720_v21, %v510_v20  ;;  %vm518_vm2 = vweird.f32 %v1720_v21 }
 0x11a   : > { %vm519_vm4 = vmor %vm517_vm3, %vm518_vm2 }
 0x11b   : > { %v513_v23 = vmul.f32 %v1720_v21, %v512_v22 }
 0x11d   : > { %v514_v24 = vmul.f32 0.5, %v513_v23 }
 0x11f   : > { %v515_v25 = vsub.f32 1.5, %v514_v24 }
 0x121   : > { %v516_v26 = vmul.f32 %v1720_v21, %v515_v25 }
 0x123   : > { %v520_v28 = vsel %vm519_vm4, %v1720_v21, %v516_v26 }
 0x124   : > { %v521_v29 = vmul.f32 %v520_v28, %v504_v11 }
 0x126   : > { %v525_v31 = vmul.f32 %v1699_v27, %v521_v29 }
 0x128   : > { %v2001_v32 = vadd.f32 %v1700_v30, %v525_v31 }
 0x12a   : > { %1583 = vmatmul.msk.f32.vlgmr.msra.gmra.mxu0 %vm492_vm0, %v2001_v32 }
 0x1a7   : > { %v558_v34 = vpop.f32.mrf.mxu0 }
 0x1a8   : > { %v2008_v35 = vadd.f32 %v1701_v33, %v558_v34  ;;  %v845_v33 = vld [vmem:[%s2334_s5 + $0x18] sm:$0xff]  ;;  %v844_v34 = vld [vmem:[%s2334_s5 + $0x10] sm:$0xff] }
 0x1aa   : > { %629 = vrot.lane.b32.xlu0 %v2008_v35, %s2350_s23  ;;  %601 = vrot.lane.b32.xlu2 %v2008_v35, %s2356_s25  ;;  %s2358_s23 = smov 24   ;;  %s2378_s25 = smov 56  }
 0x1ab   : > { %562 = vrot.lane.b32.xlu1 %v2008_v35, %s2355_s26  ;;  %s2379_s26 = smov 40  }
 0x1b2   : > { %695 = vrot.lane.b32.xlu0 %v2008_v35, %s2353_s30  ;;  %627 = vrot.lane.b32.xlu2 %v2008_v35, %s2354_s0  ;;  %s2371_s30 = smov 96   ;;  %s2372_s0 = smov 120  }
 0x1ba   : > { %693 = vrot.lane.b32.xlu0 %v2008_v35, %s2352_s27  ;;  %761 = vrot.lane.b32.xlu2 %v2008_v35, %s2345_s16  ;;  %s2348_s16 = smov 104   ;;  %s2375_s27 = smov 88  }
 0x204   : > { %v602_v36 = vpop.permute.xlu2 %601 }
 0x205   : > { %622 = vmatpush.msra.mxu3 %v602_v36  ;;  %v842_v36 = vld [vmem:[%s2334_s5] sm:$0xff] }
 0x20c   : > { %v628_v37 = vpop.permute.xlu2 %627 }
 0x214   : > { %v762_v38 = vpop.permute.xlu2 %761 }
 0x215   : > { %1593 = vmatpush.xpose.msk.msrb.mxu0 %vm564_vm5, %v762_v38 }
 0x21c   : > { %v630_v39 = vpop.permute.xlu0 %629 }
 0x21d   : > { %v563_v40 = vpop.permute.xlu1 %562  ;;  %1587 = vmatpush.xpose.msk.msrb.mxu3 %vm564_vm5, %v630_v39 }
 0x21e   : > { %1584 = vmatpush.xpose.msk.msra.mxu1 %vm564_vm5, %v563_v40 }
 0x221   : > { %1585 = vmatmul.msk.f32.vlgmr.msra.gmra.mxu1 %vm564_vm5, %v2008_v35 }
 0x224   : > { %v696_v41 = vpop.permute.xlu0 %695 }
 0x225   : > { %1590 = vmatpush.xpose.msk.msrb.mxu1 %vm564_vm5, %v696_v41 }
 0x229   : > { %865 = vmatpush.msra.mxu1 %v845_v33 }
 0x22b   : > { %866 = vmatpush.msra.mxu1 %v844_v34 }
 0x22c   : > { %v694_v42 = vpop.permute.xlu0 %693 }
 0x22d   : > { %1591 = vmatmul.msk.f32.vlgmr.msrb.gmra.mxu1 %vm564_vm5, %v694_v42 }
 0x29e   : > { %v586_v43 = vpop.f32.mrf.mxu1 }
 0x29f   : > { %v589_v44 = vmul.f32 0.35355338, %v586_v43  ;;  %v1702_v43 = vld [vmem:[%s2335_s6] ss:$0 sm:$0xff] }
 0x2a1   : > { %v590_v45 = vsel %vm564_vm5, %v589_v44, -inf }
 0x2a2   : > { %591 = vmax.xlane.f32.xlu1 %v590_v45 }
 0x2aa   : > { %v718_v46 = vpop.f32.mrf.mxu1 }
 0x2ab   : > { %v721_v47 = vmul.f32 0.35355338, %v718_v46 }
 0x2ad   : > { %v722_v48 = vsel %vm564_vm5, %v721_v47, -inf }
 0x2ae   : > { %723 = vmax.xlane.f32.xlu0 %v722_v48 }
 0x2c2   : > { %733 = vrot.lane.b32.xlu0 %v2008_v35, %s2346_s17  ;;  %s2347_s17 = smov 40  }
 0x315   : > { %v592_v49 = vpop.xlane.xlu1 %591 }
 0x316   : > { %v593_v50 = vsub.f32 %v589_v44, %v592_v49 }
 0x318   : > { %v594_v51 = vmul.f32 1.442695, %v593_v50 }
 0x31a   : > { %1721 = vpow2.f32 %v594_v51 }
 0x320   : > { %v1722_v52 = vpop.eup %1721 }
 0x321   : > { %v596_v53 = vsel %vm564_vm5, %v1722_v52, 0.0  ;;  %v724_v55 = vpop.xlane.xlu0 %723 }
 0x322   : > { %597 = vadd.xlane.f32.xlu2 %v596_v53  ;;  %v725_v0 = vsub.f32 %v721_v47, %v724_v55  ;;  %v909_v53 = vld [vmem:[%s2338_s9 + $0x18] sm:$0xff]  ;;  %v906_v55 = vld [vmem:[%s2338_s9] sm:$0xff] }
 0x324   : > { %v726_v1 = vmul.f32 1.442695, %v725_v0 }
 0x334   : > { %v734_v59 = vpop.permute.xlu0 %733 }
 0x33a   : > { %759 = vrot.lane.b32.xlu2 %v2008_v35, %s2348_s16  ;;  %s2351_s16 = smov 16  }
 0x395   : > { %v598_v54 = vpop.xlane.xlu2 %597 }
 0x396   : > { %1723 = vrcp.f32 %v598_v54  ;;  %v907_v54 = vld [vmem:[%s2338_s9 + $0x8] sm:$0xff] }
 0x397   : > { %1725 = vpow2.f32 %v726_v1  ;;  %v1703_v1 = vld [vmem:[%s2336_s7] ss:$0 sm:$0xff] }
 0x39c   : > { %v1724_v56 = vpop.eup %1723 }
 0x39d   : > { %v760_v57 = vpop.permute.xlu2 %759  ;;  %v600_v58 = vmul.f32 %v1724_v56, %v1722_v52  ;;  %v1726_v5 = vpop.eup %1725 }
 0x39e   : > { %1594 = vmatmul.msk.f32.vlgmr.msrb.gmra.mxu0 %vm564_vm5, %v760_v57  ;;  %v728_v6 = vsel %vm564_vm5, %v1726_v5, 0.0 }
 0x39f   : > { %1586 = vmatmul.msk.f32.vlgmr.msra.gmra.mxu3 %vm564_vm5, %v600_v58 }
 0x3a0   : > { %754 = vmatpush.msra.mxu3 %v734_v59 }
 0x3a7   : > { %1588 = vmatmul.msk.f32.vlgmr.msrb.gmra.mxu3 %vm564_vm5, %v628_v37 }
 0x3a8   : > { %929 = vmatpush.msrb.mxu3 %v909_v53 }
 0x41b   : > { %v784_v60 = vpop.f32.mrf.mxu0 }
 0x41c   : > { %v787_v61 = vmul.f32 0.35355338, %v784_v60 }
 0x41e   : > { %v788_v62 = vsel %vm564_vm5, %v787_v61, -inf }
 0x41f   : > { %789 = vmax.xlane.f32.xlu2 %v788_v62 }
 0x422   : > { %v2042_v63 = vpop.f32.mrf.mxu3 }
 0x42a   : > { %v652_v2 = vpop.f32.mrf.mxu3 }
 0x42b   : > { %v655_v3 = vmul.f32 0.35355338, %v652_v2 }
 0x42d   : > { %v656_v4 = vsel %vm564_vm5, %v655_v3, -inf }
 0x42e   : > { %657 = vmax.xlane.f32.xlu1 %v656_v4  ;;  %v1704_v4 = vld [vmem:[%s2337_s8] ss:$0 sm:$0xff] }
 0x436   : > { %729 = vadd.xlane.f32.xlu1 %v728_v6 }
 0x437   : > { %799 = vrot.lane.b32.xlu2 %v2008_v35, %s2347_s17  ;;  %s2349_s17 = smov 56  }
 0x492   : > { %v790_v7 = vpop.xlane.xlu2 %789 }
 0x493   : > { %v791_v9 = vsub.f32 %v787_v61, %v790_v7  ;;  %v953_v7 = vld [vmem:[%s2340_s11 + $0x38] sm:$0xff] }
 0x494   : > { %970 = vmatpush.msra.mxu0 %v953_v7 }
 0x495   : > { %v792_v10 = vmul.f32 1.442695, %v791_v9  ;;  %v952_v9 = vld [vmem:[%s2340_s11 + $0x30] sm:$0xff] }
 0x496   : > { %971 = vmatpush.msra.mxu0 %v952_v9 }
 0x497   : > { %1727 = vpow2.f32 %v792_v10  ;;  %v951_v10 = vld [vmem:[%s2340_s11 + $0x28] sm:$0xff] }
 0x498   : > { %972 = vmatpush.msra.mxu0 %v951_v10 }
 0x49a   : > { %v800_v27 = vpop.permute.xlu2 %799 }
 0x49d   : > { %v1728_v11 = vpop.eup %1727 }
 0x49e   : > { %v794_v12 = vsel %vm564_vm5, %v1728_v11, 0.0 }
 0x49f   : > { %795 = vadd.xlane.f32.xlu1 %v794_v12  ;;  %v949_v12 = vld [vmem:[%s2340_s11 + $0x18] sm:$0xff] }
 0x4a1   : > { %v658_v13 = vpop.xlane.xlu1 %657 }
 0x4a2   : > { %v659_v14 = vsub.f32 %v655_v3, %v658_v13  ;;  %v948_v13 = vld [vmem:[%s2340_s11 + $0x10] sm:$0xff] }
 0x4a4   : > { %v660_v15 = vmul.f32 1.442695, %v659_v14  ;;  %v947_v14 = vld [vmem:[%s2340_s11 + $0x8] sm:$0xff] }
 0x4a6   : > { %1729 = vpow2.f32 %v660_v15  ;;  %v946_v15 = vld [vmem:[%s2340_s11] sm:$0xff] }
 0x4a9   : > { %v730_v16 = vpop.xlane.xlu1 %729 }
 0x4aa   : > { %1731 = vrcp.f32 %v730_v16  ;;  %v1705_v16 = vld [vmem:[%s2339_s10] ss:$0 sm:$0xff] }
 0x4ac   : > { %v1730_v17 = vpop.eup %1729 }
 0x4ad   : > { %v662_v18 = vsel %vm564_vm5, %v1730_v17, 0.0 }
 0x4ae   : > { %663 = vadd.xlane.f32.xlu1 %v662_v18 }
 0x4b0   : > { %v1732_v19 = vpop.eup %1731 }
 0x4b1   : > { %v732_v20 = vmul.f32 %v1732_v19, %v1726_v5 }
 0x4b3   : > { %1592 = vmatmul.msk.f32.vlgmr.msra.gmra.mxu3 %vm564_vm5, %v732_v20 }
 0x4c7   : > { %667 = vrot.lane.b32.xlu1 %v2008_v35, %s2349_s17  ;;  %s2357_s17 = smov 8   ;;  %v843_v35 = vld [vmem:[%s2334_s5 + $0x8] sm:$0xff] }
 0x4c8   : > { %867 = vmatpush.msra.mxu1 %v843_v35 }
 0x4ca   : > { %868 = vmatpush.msra.mxu1 %v842_v36 }
 0x512   : > { %v796_v21 = vpop.xlane.xlu1 %795 }
 0x521   : > { %v664_v22 = vpop.xlane.xlu1 %663 }
 0x522   : > { %1733 = vrcp.f32 %v664_v22 }
 0x523   : > { %1735 = vrcp.f32 %v796_v21 }
 0x528   : > { %v1734_v23 = vpop.eup %1733 }
 0x529   : > { %v666_v26 = vmul.f32 %v1734_v23, %v1730_v17  ;;  %v1736_v28 = vpop.eup %1735 }
 0x52a   : > { %v798_v29 = vmul.f32 %v1736_v28, %v1728_v11  ;;  %v950_v11 = vld [vmem:[%s2340_s11 + $0x20] sm:$0xff] }
 0x52b   : > { %973 = vmatpush.msra.mxu0 %v950_v11  ;;  %v1706_v28 = vld [vmem:[%s2341_s12] ss:$0 sm:$0xff] }
 0x52d   : > { %974 = vmatpush.msra.mxu0 %v949_v12 }
 0x52f   : > { %975 = vmatpush.msra.mxu0 %v948_v13 }
 0x531   : > { %976 = vmatpush.msra.mxu0 %v947_v14 }
 0x533   : > { %977 = vmatpush.msra.mxu0 %v946_v15 }
 0x536   : > { %v756_v24 = vpop.f32.mrf.mxu3 }
 0x537   : > { %830 = vrot.lane.b32.xlu0 %v756_v24, %s2351_s16  ;;  %s2376_s16 = smov 72  }
 0x539   : > { %v668_v25 = vpop.permute.xlu1 %667 }
 0x53a   : > { %688 = vmatpush.msra.mxu2 %v668_v25 }
 0x53b   : > { %1589 = vmatmul.msk.f32.vlgmr.msra.gmra.mxu2 %vm564_vm5, %v666_v26 }
 0x53c   : > { %820 = vmatpush.msrb.mxu2 %v800_v27 }
 0x543   : > { %1595 = vmatmul.msk.f32.vlgmr.msrb.gmra.mxu2 %vm564_vm5, %v798_v29 }
 0x5a9   : > { %v831_v39 = vpop.permute.xlu0 %830 }
 0x5be   : > { %v690_v30 = vpop.f32.mrf.mxu2 }
 0x5bf   : > { %826 = vrot.lane.b32.xlu1 %v690_v30, %s2357_s17  ;;  %s2377_s17 = smov 104  }
 0x5c6   : > { %v822_v31 = vpop.f32.mrf.mxu2 }
 0x5c7   : > { %834 = vrot.lane.b32.xlu1 %v822_v31, %s2358_s23  ;;  %s2374_s23 = smov 112  }
 0x631   : > { %v827_v37 = vpop.permute.xlu1 %826 }
 0x632   : > { %v837_v38 = vsel %vm564_vm5, %v2042_v63, %v827_v37 }
 0x633   : > { %v839_v40 = vsel %vm838_vm6, %v837_v38, %v831_v39  ;;  %v1602_v39 = vld [vmem:[%s2367_s3 + $0x38] sm:$0xff] }
 0x634   : > { %1040 = vmatpush.msra.mxu2 %v1602_v39 }
 0x639   : > { %v835_v41 = vpop.permute.xlu1 %834 }
 0x63a   : > { %v841_v42 = vsel %vm840_vm7, %v839_v40, %v835_v41  ;;  %v1601_v40 = vld [vmem:[%s2367_s3 + $0x30] sm:$0xff]  ;;  %v1600_v41 = vld [vmem:[%s2367_s3 + $0x28] sm:$0xff] }
 0x63b   : > { %1596 = vmatmul.msk.f32.vlgmr.msra.gmra.mxu1 %vm492_vm0, %v841_v42  ;;  %1041 = vmatpush.msra.mxu2 %v1601_v40  ;;  %v1599_v42 = vld [vmem:[%s2367_s3 + $0x20] sm:$0xff] }
 0x63d   : > { %1042 = vmatpush.msra.mxu2 %v1600_v41 }
 0x63f   : > { %1043 = vmatpush.msra.mxu2 %v1599_v42 }
 0x6b8   : > { %v870_v44 = vpop.f32.mrf.mxu1 }
 0x6b9   : > { %v871_v45 = vadd.f32 %v1702_v43, %v870_v44 }
 0x6bb   : > { %v873_v46 = vadd.f32 %v871_v45, %v2001_v32  ;;  %v908_v32 = vld [vmem:[%s2338_s9 + $0x10] sm:$0xff] }
 0x6bc   : > { %930 = vmatpush.msrb.mxu3 %v908_v32 }
 0x6bd   : > { %v876_v47 = vsel %vm492_vm0, %v873_v46, 0.0 }
 0x6be   : > { %877 = vadd.xlane.f32.xlu2 %v876_v47  ;;  %931 = vmatpush.msrb.mxu3 %v907_v54  ;;  %v1708_v54 = vld [vmem:[%s2343_s14] ss:$0 sm:$0xff] }
 0x6c0   : > { %932 = vmatpush.msrb.mxu3 %v906_v55 }
 0x731   : > { %v878_v48 = vpop.xlane.xlu2 %877 }
 0x732   : > { %v879_v49 = vmul.f32 %v878_v48, %v1978_v8 }
 0x734   : > { %v880_v50 = vsub.f32 %v873_v46, %v879_v49 }
 0x736   : > { %v881_v51 = vmul.f32 %v880_v50, %v880_v50 }
 0x738   : > { %v882_v52 = vsel %vm492_vm0, %v881_v51, 0.0 }
 0x739   : > { %883 = vadd.xlane.f32.xlu0 %v882_v52  ;;  %v1707_v52 = vld [vmem:[%s2342_s13] ss:$0 sm:$0xff] }
 0x7ac   : > { %v884_v56 = vpop.xlane.xlu0 %883 }
 0x7ad   : > { %v885_v57 = vmul.f32 %v884_v56, %v1978_v8 }
 0x7af   : > { %v886_v58 = vadd.f32 1e-12, %v885_v57  ;;  %v1709_v57 = vld [vmem:[%s2333_s4 + $0x1] ss:$0 sm:$0xff] }
 0x7b1   : > { %1737 = vrsqrt.f32 %v886_v58  ;;  %vm893_vm9 = vweird.f32 %v886_v58 }
 0x7b7   : > { %v1738_v59 = vpop.eup %1737 }
 0x7b8   : > { %v888_v60 = vmul.f32 %v1738_v59, %v886_v58  ;;  %vm894_vm8 = vweird.f32 %v1738_v59 }
 0x7b9   : > { %vm895_vm10 = vmor %vm893_vm9, %vm894_vm8 }
 0x7ba   : > { %v889_v61 = vmul.f32 %v1738_v59, %v888_v60 }
 0x7bc   : > { %v890_v62 = vmul.f32 0.5, %v889_v61 }
 0x7be   : > { %v891_v63 = vsub.f32 1.5, %v890_v62 }
 0x7c0   : > { %v892_v0 = vmul.f32 %v1738_v59, %v891_v63 }
 0x7c2   : > { %v896_v2 = vsel %vm895_vm10, %v1738_v59, %v892_v0 }
 0x7c3   : > { %v897_v3 = vmul.f32 %v896_v2, %v880_v50 }
 0x7c5   : > { %v901_v5 = vmul.f32 %v1703_v1, %v897_v3 }
 0x7c7   : > { %v905_v6 = vadd.f32 %v1704_v4, %v901_v5 }
 0x7c9   : > { %1597 = vmatmul.msk.f32.vlgmr.msrb.gmra.mxu3 %vm492_vm0, %v905_v6 }
 0x84c   : > { %v934_v17 = vpop.f32.mrf.mxu3 }
 0x84d   : > { %v935_v18 = vadd.f32 %v1705_v16, %v934_v17 }
 0x84f   : > { %v938_v19 = vmul.f32 0.044715, %v935_v18  ;;  %v937_v25 = vmul.f32 0.5, %v935_v18 }
 0x851   : > { %v939_v20 = vmul.f32 %v938_v19, %v935_v18 }
 0x853   : > { %v940_v21 = vmul.f32 %v939_v20, %v935_v18 }
 0x855   : > { %v941_v22 = vadd.f32 %v940_v21, %v935_v18 }
 0x857   : > { %v942_v23 = vmul.f32 0.7978846, %v941_v22 }
 0x859   : > { %1739 = vtanh.f32 %v942_v23 }
 0x85f   : > { %v1740_v24 = vpop.eup %1739 }
 0x860   : > { %v944_v26 = vadd.f32 1.0, %v1740_v24 }
 0x862   : > { %v945_v27 = vmul.f32 %v944_v26, %v937_v25 }
 0x864   : > { %1598 = vmatmul.msk.f32.vlgmr.msra.gmra.mxu0 %vm958_vm11, %v945_v27 }
 0x8e1   : > { %v979_v29 = vpop.f32.mrf.mxu0 }
 0x8e2   : > { %v980_v30 = vadd.f32 %v1706_v28, %v979_v29 }
 0x8e4   : > { %v982_v31 = vadd.f32 %v980_v30, %v905_v6 }
 0x8e6   : > { %v985_v33 = vsel %vm492_vm0, %v982_v31, 0.0 }
 0x8e7   : > { %986 = vadd.xlane.f32.xlu1 %v985_v33 }
 0x95a   : > { %v987_v34 = vpop.xlane.xlu1 %986 }
 0x95b   : > { %v988_v35 = vmul.f32 %v987_v34, %v1978_v8 }
 0x95d   : > { %v989_v36 = vsub.f32 %v982_v31, %v988_v35 }
 0x95f   : > { %v990_v37 = vmul.f32 %v989_v36, %v989_v36 }
 0x961   : > { %v991_v38 = vsel %vm492_vm0, %v990_v37, 0.0 }
 0x962   : > { %992 = vadd.xlane.f32.xlu2 %v991_v38 }
 0x9d5   : > { %v993_v43 = vpop.xlane.xlu2 %992 }
 0x9d6   : > { %v994_v44 = vmul.f32 %v993_v43, %v1978_v8 }
 0x9d8   : > { %v995_v45 = vadd.f32 1e-12, %v994_v44 }
 0x9da   : > { %1741 = vrsqrt.f32 %v995_v45  ;;  %vm1002_vm13 = vweird.f32 %v995_v45 }
 0x9e0   : > { %v1742_v46 = vpop.eup %1741 }
 0x9e1   : > { %v997_v47 = vmul.f32 %v1742_v46, %v995_v45  ;;  %vm1003_vm12 = vweird.f32 %v1742_v46 }
 0x9e2   : > { %vm1004_vm14 = vmor %vm1002_vm13, %vm1003_vm12 }
 0x9e3   : > { %v998_v48 = vmul.f32 %v1742_v46, %v997_v47 }
 0x9e5   : > { %v999_v49 = vmul.f32 0.5, %v998_v48 }
 0x9e7   : > { %v1000_v50 = vsub.f32 1.5, %v999_v49 }
 0x9e9   : > { %v1001_v51 = vmul.f32 %v1742_v46, %v1000_v50 }
 0x9eb   : > { %v1005_v53 = vsel %vm1004_vm14, %v1742_v46, %v1001_v51 }
 0x9ec   : > { %v1006_v32 = vmul.f32 %v1005_v53, %v989_v36 }
 0x9ee   : > { %v1010_v55 = vmul.f32 %v1707_v52, %v1006_v32 }
 0x9f0   : > { %v2155_v56 = vadd.f32 %v1708_v54, %v1010_v55 }
 0x9f2   : > { %1604 = vmatmul.msk.f32.vlgmr.msra.gmra.mxu2 %vm492_vm0, %v2155_v56 }
 0xa75   : > { %v1045_v58 = vpop.f32.mrf.mxu2 }
 0xa76   : > { %v2162_v59 = vadd.f32 %v1709_v57, %v1045_v58  ;;  %v1620_v57 = vld [vmem:[%s2334_s5 + $0x38] sm:$0xff]  ;;  %v1619_v58 = vld [vmem:[%s2334_s5 + $0x30] sm:$0xff] }
 0xa78   : > { %1087 = vrot.lane.b32.xlu2 %v2162_v59, %s2370_s1  ;;  %1049 = vrot.lane.b32.xlu0 %v2162_v59, %s2371_s30  ;;  %s2380_s1 = smov 48   ;;  %s2381_s30 = smov 8  }
 0xa80   : > { %1113 = vrot.lane.b32.xlu0 %v2162_v59, %s2372_s0  ;;  %s2382_s0 = smov 24  }
 0xa88   : > { %1181 = vrot.lane.b32.xlu0 %v2162_v59, %s2373_s2  ;;  %s2383_s2 = smov 16  }
 0xa90   : > { %1179 = vrot.lane.b32.xlu0 %v2162_v59, %s2374_s23 }
 0xad2   : > { %v1088_v60 = vpop.permute.xlu2 %1087 }
 0xad3   : > { %1108 = vmatpush.msra.mxu3 %v1088_v60  ;;  %v1617_v60 = vld [vmem:[%s2334_s5 + $0x20] sm:$0xff] }
 0xaea   : > { %v1050_v61 = vpop.permute.xlu0 %1049 }
 0xaeb   : > { %1605 = vmatpush.xpose.msk.msrb.mxu1 %vm564_vm5, %v1050_v61 }
 0xaee   : > { %1606 = vmatmul.msk.f32.vlgmr.msrb.gmra.mxu1 %vm564_vm5, %v2162_v59 }
 0xaf2   : > { %v1114_v62 = vpop.permute.xlu0 %1113 }
 0xafa   : > { %v1182_v63 = vpop.permute.xlu0 %1181 }
 0xafb   : > { %1611 = vmatpush.xpose.msk.msrb.mxu3 %vm564_vm5, %v1182_v63 }
 0xb02   : > { %v1180_v15 = vpop.permute.xlu0 %1179 }
 0xb6b   : > { %v1072_v0 = vpop.f32.mrf.mxu1 }
 0xb6c   : > { %v1075_v1 = vmul.f32 0.35355338, %v1072_v0 }
 0xb6e   : > { %v1076_v2 = vsel %vm564_vm5, %v1075_v1, -inf }
 0xb6f   : > { %1077 = vmax.xlane.f32.xlu1 %v1076_v2 }
 0xb88   : > { %1115 = vrot.lane.b32.xlu1 %v2162_v59, %s2375_s27 }
 0xb90   : > { %1247 = vrot.lane.b32.xlu1 %v2162_v59, %s2376_s16  ;;  %s483_s16 = sand.u32 1, %s1819_s19  }
 0xb91   : > { %s484_s23 = scalar_lea.vmem [#allocation2], %s483_s16 }
 0xb92   : > { %s1521_s27 = sshll.u32 %s484_s23, 4  ;;  %s1522_s27 = int_to_ptr.vmem [resolvable:$true] %s1521_s27 }
 0xbe2   : > { %v1078_v3 = vpop.xlane.xlu1 %1077 }
 0xbe3   : > { %v1079_v4 = vsub.f32 %v1075_v1, %v1078_v3  ;;  %v1710_v3 = vld [vmem:[%s2335_s6 + $0x1] ss:$0 sm:$0xff] }
 0xbe5   : > { %v1080_v5 = vmul.f32 1.442695, %v1079_v4 }
 0xbe7   : > { %1743 = vpow2.f32 %v1080_v5 }
 0xbed   : > { %v1744_v6 = vpop.eup %1743 }
 0xbee   : > { %v1082_v7 = vsel %vm564_vm5, %v1744_v6, 0.0 }
 0xbef   : > { %1083 = vadd.xlane.f32.xlu2 %v1082_v7 }
 0xbfa   : > { %v1116_v9 = vpop.permute.xlu1 %1115 }
 0xbfb   : > { %1608 = vmatpush.xpose.msk.msrb.mxu2 %vm564_vm5, %v1116_v9 }
 0xbfe   : > { %1609 = vmatmul.msk.f32.vlgmr.msrb.gmra.mxu2 %vm564_vm5, %v1114_v62 }
 0xc02   : > { %v1248_v10 = vpop.permute.xlu1 %1247 }
 0xc03   : > { %1614 = vmatpush.xpose.msk.msra.mxu2 %vm564_vm5, %v1248_v10 }
 0xc07   : > { %1245 = vrot.lane.b32.xlu2 %v2162_v59, %s2377_s17  ;;  %s1511_s17 = scalar_lea.sflag [#allocation3], %s483_s16 }
 0xc62   : > { %v1084_v11 = vpop.xlane.xlu2 %1083 }
 0xc63   : > { %1745 = vrcp.f32 %v1084_v11 }
 0xc69   : > { %v1746_v12 = vpop.eup %1745 }
 0xc6a   : > { %v1086_v13 = vmul.f32 %v1746_v12, %v1744_v6  ;;  %v1246_v14 = vpop.permute.xlu2 %1245 }
 0xc6b   : > { %1615 = vmatmul.msk.f32.vlgmr.msra.gmra.mxu2 %vm564_vm5, %v1246_v14  ;;  %v1628_v14 = vld [vmem:[%s2338_s9 + $0x38] sm:$0xff] }
 0xc6c   : > { %1607 = vmatmul.msk.f32.vlgmr.msra.gmra.mxu3 %vm564_vm5, %v1086_v13 }
 0xc6d   : > { %1351 = vmatpush.msra.mxu3 %v1620_v57 }
 0xc6f   : > { %1352 = vmatpush.msra.mxu3 %v1619_v58 }
 0xc74   : > { %1612 = vmatmul.msk.f32.vlgmr.msrb.gmra.mxu3 %vm564_vm5, %v1180_v15  ;;  %v1626_v15 = vld [vmem:[%s2338_s9 + $0x28] sm:$0xff] }
 0xc81   : > { %v1138_v16 = vpop.f32.mrf.mxu2 }
 0xc82   : > { %v1141_v17 = vmul.f32 0.35355338, %v1138_v16  ;;  %v1625_v16 = vld [vmem:[%s2338_s9 + $0x20] sm:$0xff] }
 0xc84   : > { %v1142_v18 = vsel %vm564_vm5, %v1141_v17, -inf }
 0xc85   : > { %1143 = vmax.xlane.f32.xlu1 %v1142_v18 }
 0xcee   : > { %v1270_v19 = vpop.f32.mrf.mxu2 }
 0xcef   : > { %v1273_v20 = vmul.f32 0.35355338, %v1270_v19  ;;  %v2193_v21 = vpop.f32.mrf.mxu3 }
 0xcf1   : > { %v1274_v22 = vsel %vm564_vm5, %v1273_v20, -inf }
 0xcf2   : > { %1275 = vmax.xlane.f32.xlu2 %v1274_v22 }
 0xcf7   : > { %v1204_v23 = vpop.f32.mrf.mxu3 }
 0xcf8   : > { %v1207_v24 = vmul.f32 0.35355338, %v1204_v23  ;;  %v1144_v25 = vpop.xlane.xlu1 %1143 }
 0xcf9   : > { %v1145_v26 = vsub.f32 %v1141_v17, %v1144_v25 }
 0xcfa   : > { %v1208_v27 = vsel %vm564_vm5, %v1207_v24, -inf }
 0xcfb   : > { %v1146_v28 = vmul.f32 1.442695, %v1145_v26  ;;  %1209 = vmax.xlane.f32.xlu0 %v1208_v27  ;;  %v1711_v26 = vld [vmem:[%s2336_s7 + $0x1] ss:$0 sm:$0xff] }
 0xcfd   : > { %1747 = vpow2.f32 %v1146_v28 }
 0xd03   : > { %v1748_v29 = vpop.eup %1747 }
 0xd04   : > { %v1148_v30 = vsel %vm564_vm5, %v1748_v29, 0.0 }
 0xd05   : > { %1149 = vadd.xlane.f32.xlu1 %v1148_v30 }
 0xd1e   : > { %1153 = vrot.lane.b32.xlu1 %v2162_v59, %s2378_s25 }
 0xd65   : > { %v1276_v31 = vpop.xlane.xlu2 %1275 }
 0xd66   : > { %v1277_v33 = vsub.f32 %v1273_v20, %v1276_v31 }
 0xd68   : > { %v1278_v34 = vmul.f32 1.442695, %v1277_v33  ;;  %v1638_v33 = vld [vmem:[%s2340_s11 + $0x78] sm:$0xff] }
 0xd69   : > { %1461 = vmatpush.msrb.mxu2 %v1638_v33 }
 0xd6a   : > { %1749 = vpow2.f32 %v1278_v34  ;;  %v1637_v34 = vld [vmem:[%s2340_s11 + $0x70] sm:$0xff] }
 0xd6b   : > { %1462 = vmatpush.msrb.mxu2 %v1637_v34 }
 0xd6e   : > { %v1210_v35 = vpop.xlane.xlu0 %1209 }
 0xd6f   : > { %v1211_v36 = vsub.f32 %v1207_v24, %v1210_v35  ;;  %v1636_v35 = vld [vmem:[%s2340_s11 + $0x68] sm:$0xff] }
 0xd70   : > { %v1750_v37 = vpop.eup %1749  ;;  %1463 = vmatpush.msrb.mxu2 %v1636_v35 }
 0xd71   : > { %v1212_v38 = vmul.f32 1.442695, %v1211_v36  ;;  %v1280_v39 = vsel %vm564_vm5, %v1750_v37, 0.0  ;;  %v1635_v36 = vld [vmem:[%s2340_s11 + $0x60] sm:$0xff] }
 0xd72   : > { %1281 = vadd.xlane.f32.xlu2 %v1280_v39  ;;  %1464 = vmatpush.msrb.mxu2 %v1635_v36  ;;  %v1632_v39 = vld [vmem:[%s2340_s11 + $0x48] sm:$0xff] }
 0xd73   : > { %1751 = vpow2.f32 %v1212_v38  ;;  %v1633_v38 = vld [vmem:[%s2340_s11 + $0x50] sm:$0xff] }
 0xd78   : > { %v1150_v42 = vpop.xlane.xlu1 %1149 }
 0xd79   : > { %v1752_v40 = vpop.eup %1751  ;;  %1753 = vrcp.f32 %v1150_v42 }
 0xd7a   : > { %v1214_v41 = vsel %vm564_vm5, %v1752_v40, 0.0 }
 0xd7b   : > { %1215 = vadd.xlane.f32.xlu0 %v1214_v41  ;;  %v1713_v41 = vld [vmem:[%s2339_s10 + $0x1] ss:$0 sm:$0xff] }
 0xd7f   : > { %v1754_v43 = vpop.eup %1753 }
 0xd80   : > { %v1152_v44 = vmul.f32 %v1754_v43, %v1748_v29  ;;  %v1712_v29 = vld [vmem:[%s2337_s8 + $0x1] ss:$0 sm:$0xff] }
 0xd8a   : > { %1285 = vrot.lane.b32.xlu2 %v2162_v59, %s2379_s26 }
 0xd8f   : > { %1219 = vrot.lane.b32.xlu0 %v2162_v59, %s2380_s1  ;;  %v1618_v59 = vld [vmem:[%s2334_s5 + $0x28] sm:$0xff] }
 0xd90   : > { %v1154_v45 = vpop.permute.xlu1 %1153  ;;  %1353 = vmatpush.msra.mxu3 %v1618_v59 }
 0xd91   : > { %1174 = vmatpush.msra.mxu1 %v1154_v45 }
 0xd92   : > { %1610 = vmatmul.msk.f32.vlgmr.msra.gmra.mxu1 %vm564_vm5, %v1152_v44  ;;  %1354 = vmatpush.msra.mxu3 %v1617_v60 }
 0xde5   : > { %v1282_v46 = vpop.xlane.xlu2 %1281 }
 0xde6   : > { %1755 = vrcp.f32 %v1282_v46 }
 0xdec   : > { %v1756_v47 = vpop.eup %1755 }
 0xded   : > { %v1284_v48 = vmul.f32 %v1756_v47, %v1750_v37  ;;  %v1286_v49 = vpop.permute.xlu2 %1285  ;;  %v1634_v37 = vld [vmem:[%s2340_s11 + $0x58] sm:$0xff] }
 0xdee   : > { %1306 = vmatpush.msrb.mxu1 %v1286_v49  ;;  %v1216_v50 = vpop.xlane.xlu0 %1215  ;;  %1465 = vmatpush.msrb.mxu2 %v1634_v37 }
 0xdef   : > { %1616 = vmatmul.msk.f32.vlgmr.msrb.gmra.mxu1 %vm564_vm5, %v1284_v48  ;;  %1757 = vrcp.f32 %v1216_v50 }
 0xdf0   : > { %1466 = vmatpush.msrb.mxu2 %v1633_v38 }
 0xdf2   : > { %1467 = vmatpush.msrb.mxu2 %v1632_v39 }
 0xdf5   : > { %v1758_v51 = vpop.eup %1757 }
 0xdf6   : > { %v1218_v52 = vmul.f32 %v1758_v51, %v1752_v40  ;;  %v1631_v40 = vld [vmem:[%s2340_s11 + $0x40] sm:$0xff] }
 0xdf7   : > { %1468 = vmatpush.msrb.mxu2 %v1631_v40 }
 0xe01   : > { %v1220_v53 = vpop.permute.xlu0 %1219 }
 0xe02   : > { %1240 = vmatpush.msrb.mxu0 %v1220_v53  ;;  %v1714_v53 = vld [vmem:[%s2341_s12 + $0x1] ss:$0 sm:$0xff] }
 0xe03   : > { %1613 = vmatmul.msk.f32.vlgmr.msrb.gmra.mxu0 %vm564_vm5, %v1218_v52 }
 0xe04   : > { %1419 = vmatpush.msra.mxu0 %v1628_v14 }
 0xe0f   : > { %v1176_v32 = vpop.f32.mrf.mxu1 }
 0xe10   : > { %1312 = vrot.lane.b32.xlu0 %v1176_v32, %s2381_s30  ;;  %s1519_s30 = scalar_lea.hbm %s2344_s15, %s1945_s22 }
 0xe11   : > { %s1523_s3 = sshll.u32 %s1519_s30, 4  ;;  %s1524_s3 = int_to_ptr.hbm [resolvable:$true] %s1523_s3 }
 0xe12   : > { %s1779_s25 = sshra.s32 %s1524_s3, 4  ;;  %s1780_s25 = int_to_ptr.hbm [resolvable:$true] %s1779_s25 }
 0xe13   : > { %s1781_s22 = scalar_lea.hbm %s1780_s25, 1  ;;  %p1786_p0 = scmp.lt.s32.totalorder %s1780_s25, %s2344_s15 }
 0xe14   : > { %p1782_p11 = scmp.ne.s32.totalorder %s1780_s25, %s1781_s22 }
 0xe16   : > { %p1783_p12 = pnand %p1782_p11, %p1962_p5 }
 0xe18   : > { %p1784_p13 = pneg %p1783_p12 }
 0xe6c   : > { %v1308_v54 = vpop.f32.mrf.mxu1 }
 0xe6d   : > { %1320 = vrot.lane.b32.xlu2 %v1308_v54, %s2382_s0  ;;  %s1785_s0 = scalar_lea.hbm %s2344_s15, 2 }
 0xe6e   : > { %p1787_p1 = scmp.lt.s32.totalorder %s1785_s0, %s1781_s22 }
 0xe70   : > { %p1788_p2 = por %p1787_p1, %p1786_p0 }
 0xe72   : > { %p1789_p3 = pnand %p1788_p2, %p1784_p13 }
 0xe80   : > { %v1242_v55 = vpop.f32.mrf.mxu0 }
 0xe81   : > { %1316 = vrot.lane.b32.xlu1 %v1242_v55, %s2383_s2 }
 0xe82   : > { %v1313_v61 = vpop.permute.xlu0 %1312 }
 0xe83   : > { %v1323_v62 = vsel %vm564_vm5, %v2193_v21, %v1313_v61 }
 0xec7   : > { %v1321_v0 = vpop.permute.xlu2 %1320 }
 0xef3   : > { %v1317_v63 = vpop.permute.xlu1 %1316 }
 0xef4   : > { %v1324_v1 = vsel %vm838_vm6, %v1323_v62, %v1317_v63 }
 0xef5   : > { %v1325_v2 = vsel %vm840_vm7, %v1324_v1, %v1321_v0 }
 0xef6   : > { %1622 = vmatmul.msk.f32.vlgmr.msra.gmra.mxu3 %vm492_vm0, %v1325_v2 }
 0xf79   : > { %v1356_v4 = vpop.f32.mrf.mxu3 }
 0xf7a   : > { %v1357_v5 = vadd.f32 %v1710_v3, %v1356_v4 }
 0xf7c   : > { %v1359_v6 = vadd.f32 %v1357_v5, %v2155_v56  ;;  %v1627_v56 = vld [vmem:[%s2338_s9 + $0x30] sm:$0xff] }
 0xf7d   : > { %1420 = vmatpush.msra.mxu0 %v1627_v56 }
 0xf7e   : > { %v1364_v7 = vsel %vm492_vm0, %v1359_v6, 0.0 }
 0xf7f   : > { %1365 = vadd.xlane.f32.xlu0 %v1364_v7  ;;  %1421 = vmatpush.msra.mxu0 %v1626_v15 }
 0xf81   : > { %1422 = vmatpush.msra.mxu0 %v1625_v16 }
 0xff2   : > { %v1366_v9 = vpop.xlane.xlu0 %1365 }
 0xff3   : > { %v1367_v10 = vmul.f32 %v1366_v9, %v1978_v8  ;;  %v1715_v9 = vld [vmem:[%s2342_s13 + $0x1] ss:$0 sm:$0xff] }
 0xff5   : > { %v1368_v11 = vsub.f32 %v1359_v6, %v1367_v10 }
 0xff7   : > { %v1369_v12 = vmul.f32 %v1368_v11, %v1368_v11 }
 0xff9   : > { %v1370_v13 = vsel %vm492_vm0, %v1369_v12, 0.0 }
 0xffa   : > { %1371 = vadd.xlane.f32.xlu1 %v1370_v13 }
0x106d   : > { %v1372_v17 = vpop.xlane.xlu1 %1371 }
0x106e   : > { %v1373_v18 = vmul.f32 %v1372_v17, %v1978_v8 }
0x1070   : > { %v1374_v19 = vadd.f32 1e-12, %v1373_v18 }
0x1072   : > { %1759 = vrsqrt.f32 %v1374_v19  ;;  %vm1381_vm1 = vweird.f32 %v1374_v19 }
0x1078   : > { %v1760_v20 = vpop.eup %1759 }
0x1079   : > { %v1376_v21 = vmul.f32 %v1760_v20, %v1374_v19  ;;  %vm1382_vm15 = vweird.f32 %v1760_v20 }
0x107a   : > { %vm1383_vm2 = vmor %vm1381_vm1, %vm1382_vm15 }
0x107b   : > { %v1377_v22 = vmul.f32 %v1760_v20, %v1376_v21 }
0x107d   : > { %v1378_v23 = vmul.f32 0.5, %v1377_v22 }
0x107f   : > { %v1379_v24 = vsub.f32 1.5, %v1378_v23 }
0x1081   : > { %v1380_v25 = vmul.f32 %v1760_v20, %v1379_v24 }
0x1083   : > { %v1384_v27 = vsel %vm1383_vm2, %v1760_v20, %v1380_v25 }
0x1084   : > { %v1385_v28 = vmul.f32 %v1384_v27, %v1368_v11  ;;  %v1716_v11 = vld [vmem:[%s2343_s14 + $0x1] ss:$0 sm:$0xff] }
0x1086   : > { %v1389_v30 = vmul.f32 %v1711_v26, %v1385_v28 }
0x1088   : > { %v1393_v31 = vadd.f32 %v1712_v29, %v1389_v30 }
0x108a   : > { %1630 = vmatmul.msk.f32.vlgmr.msra.gmra.mxu0 %vm492_vm0, %v1393_v31 }
0x1107   : > { %v1424_v42 = vpop.f32.mrf.mxu0 }
0x1108   : > { %v1425_v43 = vadd.f32 %v1713_v41, %v1424_v42 }
0x110a   : > { %v1428_v44 = vmul.f32 0.044715, %v1425_v43  ;;  %v1427_v50 = vmul.f32 0.5, %v1425_v43 }
0x110c   : > { %v1429_v45 = vmul.f32 %v1428_v44, %v1425_v43 }
0x110e   : > { %v1430_v46 = vmul.f32 %v1429_v45, %v1425_v43 }
0x1110   : > { %v1431_v47 = vadd.f32 %v1430_v46, %v1425_v43 }
0x1112   : > { %v1432_v48 = vmul.f32 0.7978846, %v1431_v47 }
0x1114   : > { %1761 = vtanh.f32 %v1432_v48 }
0x111a   : > { %v1762_v49 = vpop.eup %1761 }
0x111b   : > { %v1434_v51 = vadd.f32 1.0, %v1762_v49 }
0x111d   : > { %v1435_v52 = vmul.f32 %v1434_v51, %v1427_v50 }
0x111f   : > { %1640 = vmatmul.msk.f32.vlgmr.msrb.gmra.mxu2 %vm958_vm11, %v1435_v52 }
0x11a2   : > { %v1470_v32 = vpop.f32.mrf.mxu2 }
0x11a3   : > { %v1471_v54 = vadd.f32 %v1714_v53, %v1470_v32 }
0x11a5   : > { %v1473_v55 = vadd.f32 %v1471_v54, %v1393_v31 }
0x11a7   : > { %v1478_v57 = vsel %vm492_vm0, %v1473_v55, 0.0 }
0x11a8   : > { %1479 = vadd.xlane.f32.xlu2 %v1478_v57 }
0x121b   : > { %v1480_v58 = vpop.xlane.xlu2 %1479 }
0x121c   : > { %v1481_v59 = vmul.f32 %v1480_v58, %v1978_v8 }
0x121e   : > { %v1482_v60 = vsub.f32 %v1473_v55, %v1481_v59 }
0x1220   : > { %v1483_v61 = vmul.f32 %v1482_v60, %v1482_v60 }
0x1222   : > { %v1484_v62 = vsel %vm492_vm0, %v1483_v61, 0.0  ;;  %vm1508_vm0 = vcmask 253952  }
0x1223   : > { %1485 = vadd.xlane.f32.xlu0 %v1484_v62 }
0x1296   : > { %v1486_v63 = vpop.xlane.xlu0 %1485 }
0x1297   : > { %v1487_v0 = vmul.f32 %v1486_v63, %v1978_v8 }
0x1299   : > { %v1488_v1 = vadd.f32 1e-12, %v1487_v0 }
0x129b   : > { %1763 = vrsqrt.f32 %v1488_v1  ;;  %vm1495_vm4 = vweird.f32 %v1488_v1 }
0x12a1   : > { %v1764_v2 = vpop.eup %1763 }
0x12a2   : > { %v1490_v3 = vmul.f32 %v1764_v2, %v1488_v1  ;;  %vm1496_vm3 = vweird.f32 %v1764_v2 }
0x12a3   : > { %vm1497_vm5 = vmor %vm1495_vm4, %vm1496_vm3 }
0x12a4   : > { %v1491_v4 = vmul.f32 %v1764_v2, %v1490_v3 }
0x12a6   : > { %v1492_v5 = vmul.f32 0.5, %v1491_v4 }
0x12a8   : > { %v1493_v6 = vsub.f32 1.5, %v1492_v5 }
0x12aa   : > { %v1494_v7 = vmul.f32 %v1764_v2, %v1493_v6 }
0x12ac   : > { %v1498_v8 = vsel %vm1497_vm5, %v1764_v2, %v1494_v7 }
0x12ad   : > { %v1499_v10 = vmul.f32 %v1498_v8, %v1482_v60 }
0x12af   : > { %v1503_v12 = vmul.f32 %v1715_v9, %v1499_v10 }
0x12b1   : > { %v1507_v13 = vadd.f32 %v1716_v11, %v1503_v12 }
0x12b3   : > { %1509 = vst.msk [vmem:[%s484_s23] sm:$0x1] %vm1508_vm0, %v1507_v13 }
0x12b4   : > { %1792 = shalt.err (!%p1789_p3)
}
0x12b5   : > { %1645 = dma.vmem_to_hbm [thread:$0]  (%p1962_p5), %s1522_s27, 16, %s1524_s3, %s1511_s17  }
0x12b6 PF: > { %p1651_p4 = scmp.ge.s32.totalorder %s1827_s21, 2  ;;  %s1535_s16 = sand.u32 1, %s1815_s18  }
0x12b7   : > { %s1536_s23 = scalar_lea.sflag [#allocation3], %s1535_s16 }
0x12b8   : > { %p1648_p7 = pnand %p1651_p4, %p1966_p6 }
0x12ba   : > { %p1649_p8 = pneg %p1648_p7 }
0x12bc   : > { %1810 = dma.done.wait (%p1649_p8), %s1536_s23, 16  }
0x12bd   : > { %1812 = vsyncadd (%p1649_p8), %s1536_s23, 4294967280  ;;  %s2384_s25 = sld [smem:[#allocation5_spill]]  ;;  %p25_p9 = scmp.ge.s32.totalorder %s1949_s24, 4  }
0x12be   : > { %s2385_s18 = smov %s1819_s19  ;;  %s2386_s19 = smov %s1823_s20 }
0x12bf   : > { %s2388_s21 = smov %s1949_s24  ;;  %27 = sbr.rel (!%p25_p9) target bundleno = 8 (0x8), region = 127 }
0x12c3   : > { %s2387_s20 = smov %s2384_s25 }
0x12c4   :  { %1541 = vsyncpa [#allocation3], 1 }
0x12c5   :  { %1543 = vsyncpa [#allocation3 + $0x1], 1 }

</bundles_post_ra>
